<compile_context>
chip_gen: v7x
topology: tpu7x:2x2x1
jax: 0.10.0
libtpu: 0.0.40
codegen_flags: <defaults>
</compile_context>

<pallas_src>
import math
import jax
import jax.numpy as jnp
from jax import lax
from jax.experimental import pallas as pl
from jax.experimental.pallas import tpu as pltpu

# ---------------- small model config (i_dim_model etc.) ----------------
DIM_MODEL = 32
DIM_HIDDEN = 64
DIM_V = 16
DIM_K = DIM_V
N_LAYERS = 2
N_HEAD = 2
QKV_DIM = 2 * N_HEAD * DIM_K + N_HEAD * DIM_V   # 96 (Q | K | V concatenated)


# ======================= in-kernel helpers =======================
def _layer_norm(x, g, b, eps=1e-5):
    mu = jnp.mean(x, axis=-1, keepdims=True)
    var = jnp.mean((x - mu) ** 2, axis=-1, keepdims=True)
    return (x - mu) * lax.rsqrt(var + eps) * g + b


def _softmax_rows(s):
    s = s - jnp.max(s, axis=-1, keepdims=True)
    e = jnp.exp(s)
    return e * pl.reciprocal(jnp.sum(e, axis=-1, keepdims=True), approx=True)


# ======================= fused forward kernel =======================
def fused_forward_kernel(prev_ref,                      # scalar-prefetch (B, 2) in SMEM
                         coords_ref, pe_ref,            # per-batch blocks
                         wemb_ref,
                         wqkv_ref, wo_ref,
                         ln1g_ref, ln1b_ref,
                         w1_ref, b1_ref, w2_ref, b2_ref,
                         ln2g_ref, ln2b_ref,
                         wg_ref, wn_ref,
                         dwq_ref, dwk_ref,
                         out_ref):
    b = pl.program_id(0)
    n = coords_ref.shape[0]
    inv_sqrt_dk = 1.0 / math.sqrt(DIM_K)

    # --- GraphEmbedding: linear coord embedding + positional encoding ---
    # K=2 contraction done as two broadcast multiplies on the VPU (no tiny MXU op).
    c = coords_ref[...]                                  # (N, 2)
    w = wemb_ref[...]                                    # (2, D)
    x = c[:, 0:1] * w[0:1, :] + c[:, 1:2] * w[1:2, :] + pe_ref[...]   # (N, D)

    # --- encoder stack (static unrolled over layers & heads) ---
    for l in range(N_LAYERS):
        # One wide QKV matmul per layer: (N, D) @ (D, 2*H*dk + H*dv)
        qkv = jnp.dot(x, wqkv_ref[l], preferred_element_type=jnp.float32)  # (N, 96)
        koff = N_HEAD * DIM_K
        voff = 2 * N_HEAD * DIM_K

        mha = jnp.zeros((n, DIM_MODEL), jnp.float32)
        for h in range(N_HEAD):
            q = qkv[:, h * DIM_K:(h + 1) * DIM_K]                      # (N, dk)
            k = qkv[:, koff + h * DIM_K: koff + (h + 1) * DIM_K]       # (N, dk)
            v = qkv[:, voff + h * DIM_V: voff + (h + 1) * DIM_V]       # (N, dv)
            # q @ k^T without an explicit transpose (contract on last dims)
            s = lax.dot_general(q, k, (((1,), (1,)), ((), ())),
                                preferred_element_type=jnp.float32) * inv_sqrt_dk
            p = _softmax_rows(s)                                        # (N, N)
            head = jnp.dot(p, v, preferred_element_type=jnp.float32)    # (N, dv)
            # per-head accumulate through the matching W_o slice (no concat)
            mha = mha + jnp.dot(head, wo_ref[l, h * DIM_V:(h + 1) * DIM_V, :],
                                preferred_element_type=jnp.float32)

        h1 = _layer_norm(x + mha, ln1g_ref[l], ln1b_ref[l])
        ff = jnp.maximum(
            jnp.dot(h1, w1_ref[l], preferred_element_type=jnp.float32) + b1_ref[l],
            0.0)
        ff = jnp.dot(ff, w2_ref[l], preferred_element_type=jnp.float32) + b2_ref[l]
        x = _layer_norm(h1 + ff, ln2g_ref[l], ln2b_ref[l])

    # --- max-pool over nodes + graph/node projections + fusion ---
    gmax = jnp.max(x, axis=0, keepdims=True)                            # (1, D)
    graph_feat = jnp.dot(gmax, wg_ref[...], preferred_element_type=jnp.float32)
    fusion = jnp.dot(x, wn_ref[...], preferred_element_type=jnp.float32) + graph_feat

    # --- Compatability decoder: Q K^T, mask diag + prev_exchange, log-softmax ---
    q = jnp.dot(fusion, dwq_ref[...], preferred_element_type=jnp.float32)
    k = jnp.dot(fusion, dwk_ref[...], preferred_element_type=jnp.float32)
    compat = lax.dot_general(q, k, (((1,), (1,)), ((), ())),
                             preferred_element_type=jnp.float32)        # (N, N)

    row = lax.broadcasted_iota(jnp.int32, (n, n), 0)
    col = lax.broadcasted_iota(jnp.int32, (n, n), 1)
    i0 = prev_ref[b, 0]
    i1 = prev_ref[b, 1]
    mask = (row == col) | ((row == i0) & (col == i1)) | ((row == i1) & (col == i0))
    compat = jnp.where(mask, -jnp.inf, compat)

    # log-softmax over the flattened set of N*N logits (done on the (N,N) tile;
    # the flatten to (N*N,) is a free wrapper-side reshape).
    m = jnp.max(compat, keepdims=True)                                   # (1, 1)
    z = jnp.sum(jnp.exp(compat - m), keepdims=True)                      # (1, 1)
    out_ref[...] = compat - m - jnp.log(z)                               # (N, N) log-probs


# ======================= pallas_call wrapper =======================
def fused_forward_call(params, problems, pos_enc, prev_exchange):
    B, N, _ = problems.shape
    D, Dh, L = DIM_MODEL, DIM_HIDDEN, N_LAYERS

    const = lambda shape: pl.BlockSpec(shape, lambda b, pe: (0,) * len(shape))

    grid_spec = pltpu.PrefetchScalarGridSpec(
        num_scalar_prefetch=1,
        grid=(B,),
        in_specs=[
            pl.BlockSpec((None, N, 2), lambda b, pe: (b, 0, 0)),   # coords
            pl.BlockSpec((None, N, D), lambda b, pe: (b, 0, 0)),   # pos enc
            const((2, D)),                                          # embed_w
            const((L, D, QKV_DIM)),                                 # wqkv (stacked)
            const((L, N_HEAD * DIM_V, D)),                          # wo
            const((L, 1, D)), const((L, 1, D)),                     # ln1 g/b
            const((L, D, Dh)), const((L, 1, Dh)),                   # w1/b1
            const((L, Dh, D)), const((L, 1, D)),                    # w2/b2
            const((L, 1, D)), const((L, 1, D)),                     # ln2 g/b
            const((D, D)), const((D, D)),                           # proj graph/node
            const((D, D)), const((D, D)),                           # decoder Wq/Wk
        ],
        out_specs=pl.BlockSpec((None, N, N), lambda b, pe: (b, 0, 0)),
    )

    return pl.pallas_call(
        fused_forward_kernel,
        out_shape=jax.ShapeDtypeStruct((B, N, N), jnp.float32),
        grid_spec=grid_spec,
        compiler_params=pltpu.CompilerParams(dimension_semantics=("parallel",)),
    )(prev_exchange, problems, pos_enc,
      params["embed_w"], params["wqkv"], params["wo"],
      params["ln1_g"], params["ln1_b"],
      params["w1"], params["b1"], params["w2"], params["b2"],
      params["ln2_g"], params["ln2_b"],
      params["proj_graph"], params["proj_node"],
      params["dec_wq"], params["dec_wk"])


# ======================= parameters & glue =======================
def _uniform(key, shape, stdv):
    return jax.random.uniform(key, shape, jnp.float32, minval=-stdv, maxval=stdv)


def init_params(key):
    D, Dh, L = DIM_MODEL, DIM_HIDDEN, N_LAYERS
    ks = jax.random.split(key, 10)
    p = {
        "embed_w": _uniform(ks[0], (2, D), 1.0 / math.sqrt(D)),
        # Q|K|V stacked into one matrix per layer -> one wide matmul in-kernel.
        "wqkv": _uniform(ks[1], (L, D, QKV_DIM), 1.0 / math.sqrt(DIM_K)),
        "wo": _uniform(ks[2], (L, N_HEAD * DIM_V, D), 1.0 / math.sqrt(D)),
        "ln1_g": jnp.ones((L, 1, D), jnp.float32),
        "ln1_b": jnp.zeros((L, 1, D), jnp.float32),
        "w1": _uniform(ks[3], (L, D, Dh), 1.0 / math.sqrt(Dh)),
        "b1": _uniform(ks[4], (L, 1, Dh), 1.0 / math.sqrt(Dh)),
        "w2": _uniform(ks[5], (L, Dh, D), 1.0 / math.sqrt(D)),
        "b2": _uniform(ks[6], (L, 1, D), 1.0 / math.sqrt(D)),
        "ln2_g": jnp.ones((L, 1, D), jnp.float32),
        "ln2_b": jnp.zeros((L, 1, D), jnp.float32),
        "proj_graph": _uniform(ks[7], (D, D), 1.0 / math.sqrt(D)),
        "proj_node": _uniform(ks[8], (D, D), 1.0 / math.sqrt(D)),
    }
    kq, kk = jax.random.split(ks[9])
    p["dec_wq"] = _uniform(kq, (D, D), 1.0 / math.sqrt(D))
    p["dec_wk"] = _uniform(kk, (D, D), 1.0 / math.sqrt(D))
    return p


def _sinusoid_table(n, d):
    pos = jnp.arange(n, dtype=jnp.float32)[:, None]
    i = jnp.arange(d, dtype=jnp.float32)[None, :]
    angle = pos / jnp.power(10000.0, (2.0 * jnp.floor(i / 2.0)) / d)
    return jnp.where((jnp.arange(d)[None, :] % 2) == 0, jnp.sin(angle), jnp.cos(angle))


def tsp_improve_forward(params, problems, solution_indexes, prev_exchange,
                        sample_key, do_sample=True):
    B, N, _ = problems.shape
    # TODO(synk): GraphEmbedding source is not provided; using a linear coord
    # embedding + sinusoidal positional encoding indexed by each node's position
    # in the current solution permutation (stand-in, computed outside the kernel).
    pe_table = _sinusoid_table(N, DIM_MODEL)
    node_pos = jnp.argsort(solution_indexes, axis=-1)      # position of node i in tour
    pos_enc = pe_table[node_pos].astype(jnp.float32)       # (B, N, D)

    # TODO(synk): TransformerEncoderL source is not provided; standard post-LN
    # multi-head attention + FFN encoder layer is implemented inside the fused kernel.
    logp = fused_forward_call(params, problems.astype(jnp.float32), pos_enc,
                              prev_exchange.astype(jnp.int32))          # (B, N, N) log-probs
    logits = logp.reshape(B, N * N)                                     # free wrapper reshape

    # sampling / argmax + gather (tiny glue, outside kernel)
    if do_sample:
        pair_index = jax.random.categorical(sample_key, logits, axis=-1)
    else:
        pair_index = jnp.argmax(logits, axis=-1)
    selected_loglik = jnp.take_along_axis(logits, pair_index[:, None], axis=1)[:, 0]
    selected_likelihood = jnp.exp(selected_loglik)          # == softmax prob of chosen pair
    col_selected = pair_index % N
    row_selected = pair_index // N
    pair = jnp.stack([row_selected, col_selected], axis=-1)
    return selected_likelihood, pair


# ======================= demo =======================
if __name__ == "__main__":
    B, N = 2, 8
    root = jax.random.PRNGKey(0)
    k_param, k_prob, k_perm, k_sample = jax.random.split(root, 4)

    params = init_params(k_param)
    problems = jax.random.uniform(k_prob, (B, N, 2), jnp.float32)          # TSP coords
    solution_indexes = jnp.stack(
        [jax.random.permutation(jax.random.fold_in(k_perm, b), N) for b in range(B)]
    ).astype(jnp.int32)                                                    # (B, N) tours
    prev_exchange = jnp.array([[0, 1], [2, 3]], dtype=jnp.int32)           # (B, 2)

    likelihood, pair = tsp_improve_forward(params, problems, solution_indexes,
                                           prev_exchange, k_sample, do_sample=True)
    jax.block_until_ready((likelihood, pair))
    assert likelihood.shape == (B,) and pair.shape == (B, 2)
    print("KERNEL_OK")
</pallas_src>

<mosaic_0001>
module attributes {stable_mosaic.version = 11 : i64} {
  func.func @fused_forward_kernel(%arg0: i32, %arg1: memref<2x2xi32, #tpu.memory_space<smem>>, %arg2: memref<1x8x2xf32, #tpu.memory_space<vmem>>, %arg3: memref<1x8x32xf32, #tpu.memory_space<vmem>>, %arg4: memref<2x32xf32, #tpu.memory_space<vmem>>, %arg5: memref<2x32x96xf32, #tpu.memory_space<vmem>>, %arg6: memref<2x32x32xf32, #tpu.memory_space<vmem>>, %arg7: memref<2x1x32xf32, #tpu.memory_space<vmem>>, %arg8: memref<2x1x32xf32, #tpu.memory_space<vmem>>, %arg9: memref<2x32x64xf32, #tpu.memory_space<vmem>>, %arg10: memref<2x1x64xf32, #tpu.memory_space<vmem>>, %arg11: memref<2x64x32xf32, #tpu.memory_space<vmem>>, %arg12: memref<2x1x32xf32, #tpu.memory_space<vmem>>, %arg13: memref<2x1x32xf32, #tpu.memory_space<vmem>>, %arg14: memref<2x1x32xf32, #tpu.memory_space<vmem>>, %arg15: memref<32x32xf32, #tpu.memory_space<vmem>>, %arg16: memref<32x32xf32, #tpu.memory_space<vmem>>, %arg17: memref<32x32xf32, #tpu.memory_space<vmem>>, %arg18: memref<32x32xf32, #tpu.memory_space<vmem>>, %arg19: memref<1x8x8xf32, #tpu.memory_space<vmem>>) attributes {dimension_semantics = [#tpu.dimension_semantics<parallel>], iteration_bounds = array<i64: 2>, scalar_prefetch = 1 : i64, scratch_operands = 0 : i64, tpu.core_type = #tpu.core_type<tc>, window_params = [{transform_indices = @transform_0, window_bounds = array<i64: 1, 8, 2>}, {transform_indices = @transform_1, window_bounds = array<i64: 1, 8, 32>}, {pipeline_mode = #tpu.pipeline_mode<synchronous>, transform_indices = @transform_2, window_bounds = array<i64: 2, 32>}, {pipeline_mode = #tpu.pipeline_mode<synchronous>, transform_indices = @transform_3, window_bounds = array<i64: 2, 32, 96>}, {pipeline_mode = #tpu.pipeline_mode<synchronous>, transform_indices = @transform_4, window_bounds = array<i64: 2, 32, 32>}, {pipeline_mode = #tpu.pipeline_mode<synchronous>, transform_indices = @transform_5, window_bounds = array<i64: 2, 1, 32>}, {pipeline_mode = #tpu.pipeline_mode<synchronous>, transform_indices = @transform_6, window_bounds = array<i64: 2, 1, 32>}, {pipeline_mode = #tpu.pipeline_mode<synchronous>, transform_indices = @transform_7, window_bounds = array<i64: 2, 32, 64>}, {pipeline_mode = #tpu.pipeline_mode<synchronous>, transform_indices = @transform_8, window_bounds = array<i64: 2, 1, 64>}, {pipeline_mode = #tpu.pipeline_mode<synchronous>, transform_indices = @transform_9, window_bounds = array<i64: 2, 64, 32>}, {pipeline_mode = #tpu.pipeline_mode<synchronous>, transform_indices = @transform_10, window_bounds = array<i64: 2, 1, 32>}, {pipeline_mode = #tpu.pipeline_mode<synchronous>, transform_indices = @transform_11, window_bounds = array<i64: 2, 1, 32>}, {pipeline_mode = #tpu.pipeline_mode<synchronous>, transform_indices = @transform_12, window_bounds = array<i64: 2, 1, 32>}, {pipeline_mode = #tpu.pipeline_mode<synchronous>, transform_indices = @transform_13, window_bounds = array<i64: 32, 32>}, {pipeline_mode = #tpu.pipeline_mode<synchronous>, transform_indices = @transform_14, window_bounds = array<i64: 32, 32>}, {pipeline_mode = #tpu.pipeline_mode<synchronous>, transform_indices = @transform_15, window_bounds = array<i64: 32, 32>}, {pipeline_mode = #tpu.pipeline_mode<synchronous>, transform_indices = @transform_16, window_bounds = array<i64: 32, 32>}, {transform_indices = @transform_17, window_bounds = array<i64: 1, 8, 8>}]} {
    %c0 = arith.constant 0 : index
    %c0_0 = arith.constant 0 : index
    %c0_1 = arith.constant 0 : index
    %0 = vector.load %arg2[%c0, %c0_0, %c0_1] : memref<1x8x2xf32, #tpu.memory_space<vmem>>, vector<1x8x2xf32>
    %1 = vector.shape_cast %0 : vector<1x8x2xf32> to vector<8x2xf32>
    %c0_2 = arith.constant 0 : index
    %c0_3 = arith.constant 0 : index
    %2 = vector.load %arg4[%c0_2, %c0_3] : memref<2x32xf32, #tpu.memory_space<vmem>>, vector<2x32xf32>
    %3 = vector.extract_strided_slice %1 {offsets = [0, 0], sizes = [8, 1], strides = [1, 1]} : vector<8x2xf32> to vector<8x1xf32>
    %4 = vector.extract_strided_slice %2 {offsets = [0, 0], sizes = [1, 32], strides = [1, 1]} : vector<2x32xf32> to vector<1x32xf32>
    %5 = vector.broadcast %3 : vector<8x1xf32> to vector<8x32xf32>
    %6 = vector.broadcast %4 : vector<1x32xf32> to vector<8x32xf32>
    %7 = arith.mulf %5, %6 : vector<8x32xf32>
    %8 = vector.extract_strided_slice %1 {offsets = [0, 1], sizes = [8, 1], strides = [1, 1]} : vector<8x2xf32> to vector<8x1xf32>
    %9 = vector.extract_strided_slice %2 {offsets = [1, 0], sizes = [1, 32], strides = [1, 1]} : vector<2x32xf32> to vector<1x32xf32>
    %10 = vector.broadcast %8 : vector<8x1xf32> to vector<8x32xf32>
    %11 = vector.broadcast %9 : vector<1x32xf32> to vector<8x32xf32>
    %12 = arith.mulf %10, %11 : vector<8x32xf32>
    %13 = arith.addf %7, %12 : vector<8x32xf32>
    %c0_4 = arith.constant 0 : index
    %c0_5 = arith.constant 0 : index
    %c0_6 = arith.constant 0 : index
    %14 = vector.load %arg3[%c0_4, %c0_5, %c0_6] : memref<1x8x32xf32, #tpu.memory_space<vmem>>, vector<1x8x32xf32>
    %15 = vector.shape_cast %14 : vector<1x8x32xf32> to vector<8x32xf32>
    %16 = arith.addf %13, %15 : vector<8x32xf32>
    %c0_7 = arith.constant 0 : index
    %c0_8 = arith.constant 0 : index
    %c0_9 = arith.constant 0 : index
    %17 = vector.load %arg5[%c0_7, %c0_8, %c0_9] : memref<2x32x96xf32, #tpu.memory_space<vmem>>, vector<1x32x96xf32>
    %18 = vector.shape_cast %17 : vector<1x32x96xf32> to vector<32x96xf32>
    %cst = arith.constant dense<0.000000e+00> : vector<8x96xf32>
    %19 = tpu.matmul %16, %18, %cst {dimension_numbers = #tpu.dot_dimension_numbers<[1], [0], [0], [1], [0, 0, 1, 1], [], []>} : vector<8x32xf32>, vector<32x96xf32>, vector<8x96xf32> -> vector<8x96xf32>
    %cst_10 = arith.constant 0.000000e+00 : f32
    %20 = vector.broadcast %cst_10 : f32 to vector<8x32xf32>
    %21 = vector.extract_strided_slice %19 {offsets = [0, 0], sizes = [8, 16], strides = [1, 1]} : vector<8x96xf32> to vector<8x16xf32>
    %22 = vector.extract_strided_slice %19 {offsets = [0, 32], sizes = [8, 16], strides = [1, 1]} : vector<8x96xf32> to vector<8x16xf32>
    %23 = vector.extract_strided_slice %19 {offsets = [0, 64], sizes = [8, 16], strides = [1, 1]} : vector<8x96xf32> to vector<8x16xf32>
    %cst_11 = arith.constant dense<0.000000e+00> : vector<8x8xf32>
    %24 = tpu.matmul %21, %22, %cst_11 {dimension_numbers = #tpu.dot_dimension_numbers<[1], [1], [0], [0], [0, 0, 1, 0], [], []>} : vector<8x16xf32>, vector<8x16xf32>, vector<8x8xf32> -> vector<8x8xf32>
    %cst_12 = arith.constant 2.500000e-01 : f32
    %25 = vector.broadcast %cst_12 : f32 to vector<8x8xf32>
    %26 = arith.mulf %24, %25 : vector<8x8xf32>
    %cst_13 = arith.constant dense<0xFF800000> : vector<8xf32>
    %27 = vector.multi_reduction <maximumf>, %26, %cst_13 [1] : vector<8x8xf32> to vector<8xf32>
    %28 = vector.shape_cast %27 : vector<8xf32> to vector<8x1xf32>
    %29 = vector.broadcast %28 : vector<8x1xf32> to vector<8x8xf32>
    %30 = arith.subf %26, %29 : vector<8x8xf32>
    %31 = math.exp %30 : vector<8x8xf32>
    %cst_14 = arith.constant dense<0.000000e+00> : vector<8xf32>
    %32 = vector.multi_reduction <add>, %31, %cst_14 [1] : vector<8x8xf32> to vector<8xf32>
    %33 = vector.shape_cast %32 : vector<8xf32> to vector<8x1xf32>
    %34 = tpu.reciprocal %33 {approx = true} : vector<8x1xf32> -> vector<8x1xf32>
    %35 = vector.broadcast %34 : vector<8x1xf32> to vector<8x8xf32>
    %36 = arith.mulf %31, %35 : vector<8x8xf32>
    %cst_15 = arith.constant dense<0.000000e+00> : vector<8x16xf32>
    %37 = tpu.matmul %36, %23, %cst_15 {dimension_numbers = #tpu.dot_dimension_numbers<[1], [0], [0], [1], [0, 0, 1, 1], [], []>} : vector<8x8xf32>, vector<8x16xf32>, vector<8x16xf32> -> vector<8x16xf32>
    %c0_16 = arith.constant 0 : index
    %c0_17 = arith.constant 0 : index
    %c0_18 = arith.constant 0 : index
    %38 = vector.load %arg6[%c0_16, %c0_17, %c0_18] : memref<2x32x32xf32, #tpu.memory_space<vmem>>, vector<1x16x32xf32>
    %39 = vector.shape_cast %38 : vector<1x16x32xf32> to vector<16x32xf32>
    %cst_19 = arith.constant dense<0.000000e+00> : vector<8x32xf32>
    %40 = tpu.matmul %37, %39, %cst_19 {dimension_numbers = #tpu.dot_dimension_numbers<[1], [0], [0], [1], [0, 0, 1, 1], [], []>} : vector<8x16xf32>, vector<16x32xf32>, vector<8x32xf32> -> vector<8x32xf32>
    %41 = arith.addf %20, %40 : vector<8x32xf32>
    %42 = vector.extract_strided_slice %19 {offsets = [0, 16], sizes = [8, 16], strides = [1, 1]} : vector<8x96xf32> to vector<8x16xf32>
    %43 = vector.extract_strided_slice %19 {offsets = [0, 48], sizes = [8, 16], strides = [1, 1]} : vector<8x96xf32> to vector<8x16xf32>
    %44 = vector.extract_strided_slice %19 {offsets = [0, 80], sizes = [8, 16], strides = [1, 1]} : vector<8x96xf32> to vector<8x16xf32>
    %cst_20 = arith.constant dense<0.000000e+00> : vector<8x8xf32>
    %45 = tpu.matmul %42, %43, %cst_20 {dimension_numbers = #tpu.dot_dimension_numbers<[1], [1], [0], [0], [0, 0, 1, 0], [], []>} : vector<8x16xf32>, vector<8x16xf32>, vector<8x8xf32> -> vector<8x8xf32>
    %cst_21 = arith.constant 2.500000e-01 : f32
    %46 = vector.broadcast %cst_21 : f32 to vector<8x8xf32>
    %47 = arith.mulf %45, %46 : vector<8x8xf32>
    %cst_22 = arith.constant dense<0xFF800000> : vector<8xf32>
    %48 = vector.multi_reduction <maximumf>, %47, %cst_22 [1] : vector<8x8xf32> to vector<8xf32>
    %49 = vector.shape_cast %48 : vector<8xf32> to vector<8x1xf32>
    %50 = vector.broadcast %49 : vector<8x1xf32> to vector<8x8xf32>
    %51 = arith.subf %47, %50 : vector<8x8xf32>
    %52 = math.exp %51 : vector<8x8xf32>
    %cst_23 = arith.constant dense<0.000000e+00> : vector<8xf32>
    %53 = vector.multi_reduction <add>, %52, %cst_23 [1] : vector<8x8xf32> to vector<8xf32>
    %54 = vector.shape_cast %53 : vector<8xf32> to vector<8x1xf32>
    %55 = tpu.reciprocal %54 {approx = true} : vector<8x1xf32> -> vector<8x1xf32>
    %56 = vector.broadcast %55 : vector<8x1xf32> to vector<8x8xf32>
    %57 = arith.mulf %52, %56 : vector<8x8xf32>
    %cst_24 = arith.constant dense<0.000000e+00> : vector<8x16xf32>
    %58 = tpu.matmul %57, %44, %cst_24 {dimension_numbers = #tpu.dot_dimension_numbers<[1], [0], [0], [1], [0, 0, 1, 1], [], []>} : vector<8x8xf32>, vector<8x16xf32>, vector<8x16xf32> -> vector<8x16xf32>
    %c0_25 = arith.constant 0 : index
    %c16 = arith.constant 16 : index
    %c0_26 = arith.constant 0 : index
    %59 = vector.load %arg6[%c0_25, %c16, %c0_26] : memref<2x32x32xf32, #tpu.memory_space<vmem>>, vector<1x16x32xf32>
    %60 = vector.shape_cast %59 : vector<1x16x32xf32> to vector<16x32xf32>
    %cst_27 = arith.constant dense<0.000000e+00> : vector<8x32xf32>
    %61 = tpu.matmul %58, %60, %cst_27 {dimension_numbers = #tpu.dot_dimension_numbers<[1], [0], [0], [1], [0, 0, 1, 1], [], []>} : vector<8x16xf32>, vector<16x32xf32>, vector<8x32xf32> -> vector<8x32xf32>
    %62 = arith.addf %41, %61 : vector<8x32xf32>
    %63 = arith.addf %16, %62 : vector<8x32xf32>
    %c0_28 = arith.constant 0 : index
    %c0_29 = arith.constant 0 : index
    %c0_30 = arith.constant 0 : index
    %64 = vector.load %arg7[%c0_28, %c0_29, %c0_30] : memref<2x1x32xf32, #tpu.memory_space<vmem>>, vector<1x1x32xf32>
    %65 = vector.shape_cast %64 : vector<1x1x32xf32> to vector<1x32xf32>
    %c0_31 = arith.constant 0 : index
    %c0_32 = arith.constant 0 : index
    %c0_33 = arith.constant 0 : index
    %66 = vector.load %arg8[%c0_31, %c0_32, %c0_33] : memref<2x1x32xf32, #tpu.memory_space<vmem>>, vector<1x1x32xf32>
    %67 = vector.shape_cast %66 : vector<1x1x32xf32> to vector<1x32xf32>
    %cst_34 = arith.constant dense<0.000000e+00> : vector<8xf32>
    %68 = vector.multi_reduction <add>, %63, %cst_34 [1] : vector<8x32xf32> to vector<8xf32>
    %69 = vector.shape_cast %68 : vector<8xf32> to vector<8x1xf32>
    %cst_35 = arith.constant 3.200000e+01 : f32
    %70 = vector.broadcast %cst_35 : f32 to vector<8x1xf32>
    %71 = arith.divf %69, %70 : vector<8x1xf32>
    %72 = vector.broadcast %71 : vector<8x1xf32> to vector<8x32xf32>
    %73 = arith.subf %63, %72 : vector<8x32xf32>
    %74 = arith.mulf %73, %73 : vector<8x32xf32>
    %cst_36 = arith.constant dense<0.000000e+00> : vector<8xf32>
    %75 = vector.multi_reduction <add>, %74, %cst_36 [1] : vector<8x32xf32> to vector<8xf32>
    %76 = vector.shape_cast %75 : vector<8xf32> to vector<8x1xf32>
    %cst_37 = arith.constant 3.200000e+01 : f32
    %77 = vector.broadcast %cst_37 : f32 to vector<8x1xf32>
    %78 = arith.divf %76, %77 : vector<8x1xf32>
    %79 = vector.broadcast %71 : vector<8x1xf32> to vector<8x32xf32>
    %80 = arith.subf %63, %79 : vector<8x32xf32>
    %cst_38 = arith.constant 9.99999974E-6 : f32
    %81 = vector.broadcast %cst_38 : f32 to vector<8x1xf32>
    %82 = arith.addf %78, %81 : vector<8x1xf32>
    %83 = math.rsqrt %82 : vector<8x1xf32>
    %84 = vector.broadcast %83 : vector<8x1xf32> to vector<8x32xf32>
    %85 = arith.mulf %80, %84 : vector<8x32xf32>
    %86 = vector.broadcast %65 : vector<1x32xf32> to vector<8x32xf32>
    %87 = arith.mulf %85, %86 : vector<8x32xf32>
    %88 = vector.broadcast %67 : vector<1x32xf32> to vector<8x32xf32>
    %89 = arith.addf %87, %88 : vector<8x32xf32>
    %c0_39 = arith.constant 0 : index
    %c0_40 = arith.constant 0 : index
    %c0_41 = arith.constant 0 : index
    %90 = vector.load %arg9[%c0_39, %c0_40, %c0_41] : memref<2x32x64xf32, #tpu.memory_space<vmem>>, vector<1x32x64xf32>
    %91 = vector.shape_cast %90 : vector<1x32x64xf32> to vector<32x64xf32>
    %cst_42 = arith.constant dense<0.000000e+00> : vector<8x64xf32>
    %92 = tpu.matmul %89, %91, %cst_42 {dimension_numbers = #tpu.dot_dimension_numbers<[1], [0], [0], [1], [0, 0, 1, 1], [], []>} : vector<8x32xf32>, vector<32x64xf32>, vector<8x64xf32> -> vector<8x64xf32>
    %c0_43 = arith.constant 0 : index
    %c0_44 = arith.constant 0 : index
    %c0_45 = arith.constant 0 : index
    %93 = vector.load %arg10[%c0_43, %c0_44, %c0_45] : memref<2x1x64xf32, #tpu.memory_space<vmem>>, vector<1x1x64xf32>
    %94 = vector.shape_cast %93 : vector<1x1x64xf32> to vector<1x64xf32>
    %95 = vector.broadcast %94 : vector<1x64xf32> to vector<8x64xf32>
    %96 = arith.addf %92, %95 : vector<8x64xf32>
    %cst_46 = arith.constant 0.000000e+00 : f32
    %97 = vector.broadcast %cst_46 : f32 to vector<8x64xf32>
    %98 = arith.maximumf %96, %97 : vector<8x64xf32>
    %c0_47 = arith.constant 0 : index
    %c0_48 = arith.constant 0 : index
    %c0_49 = arith.constant 0 : index
    %99 = vector.load %arg11[%c0_47, %c0_48, %c0_49] : memref<2x64x32xf32, #tpu.memory_space<vmem>>, vector<1x64x32xf32>
    %100 = vector.shape_cast %99 : vector<1x64x32xf32> to vector<64x32xf32>
    %cst_50 = arith.constant dense<0.000000e+00> : vector<8x32xf32>
    %101 = tpu.matmul %98, %100, %cst_50 {dimension_numbers = #tpu.dot_dimension_numbers<[1], [0], [0], [1], [0, 0, 1, 1], [], []>} : vector<8x64xf32>, vector<64x32xf32>, vector<8x32xf32> -> vector<8x32xf32>
    %c0_51 = arith.constant 0 : index
    %c0_52 = arith.constant 0 : index
    %c0_53 = arith.constant 0 : index
    %102 = vector.load %arg12[%c0_51, %c0_52, %c0_53] : memref<2x1x32xf32, #tpu.memory_space<vmem>>, vector<1x1x32xf32>
    %103 = vector.shape_cast %102 : vector<1x1x32xf32> to vector<1x32xf32>
    %104 = vector.broadcast %103 : vector<1x32xf32> to vector<8x32xf32>
    %105 = arith.addf %101, %104 : vector<8x32xf32>
    %106 = arith.addf %89, %105 : vector<8x32xf32>
    %c0_54 = arith.constant 0 : index
    %c0_55 = arith.constant 0 : index
    %c0_56 = arith.constant 0 : index
    %107 = vector.load %arg13[%c0_54, %c0_55, %c0_56] : memref<2x1x32xf32, #tpu.memory_space<vmem>>, vector<1x1x32xf32>
    %108 = vector.shape_cast %107 : vector<1x1x32xf32> to vector<1x32xf32>
    %c0_57 = arith.constant 0 : index
    %c0_58 = arith.constant 0 : index
    %c0_59 = arith.constant 0 : index
    %109 = vector.load %arg14[%c0_57, %c0_58, %c0_59] : memref<2x1x32xf32, #tpu.memory_space<vmem>>, vector<1x1x32xf32>
    %110 = vector.shape_cast %109 : vector<1x1x32xf32> to vector<1x32xf32>
    %cst_60 = arith.constant dense<0.000000e+00> : vector<8xf32>
    %111 = vector.multi_reduction <add>, %106, %cst_60 [1] : vector<8x32xf32> to vector<8xf32>
    %112 = vector.shape_cast %111 : vector<8xf32> to vector<8x1xf32>
    %cst_61 = arith.constant 3.200000e+01 : f32
    %113 = vector.broadcast %cst_61 : f32 to vector<8x1xf32>
    %114 = arith.divf %112, %113 : vector<8x1xf32>
    %115 = vector.broadcast %114 : vector<8x1xf32> to vector<8x32xf32>
    %116 = arith.subf %106, %115 : vector<8x32xf32>
    %117 = arith.mulf %116, %116 : vector<8x32xf32>
    %cst_62 = arith.constant dense<0.000000e+00> : vector<8xf32>
    %118 = vector.multi_reduction <add>, %117, %cst_62 [1] : vector<8x32xf32> to vector<8xf32>
    %119 = vector.shape_cast %118 : vector<8xf32> to vector<8x1xf32>
    %cst_63 = arith.constant 3.200000e+01 : f32
    %120 = vector.broadcast %cst_63 : f32 to vector<8x1xf32>
    %121 = arith.divf %119, %120 : vector<8x1xf32>
    %122 = vector.broadcast %114 : vector<8x1xf32> to vector<8x32xf32>
    %123 = arith.subf %106, %122 : vector<8x32xf32>
    %cst_64 = arith.constant 9.99999974E-6 : f32
    %124 = vector.broadcast %cst_64 : f32 to vector<8x1xf32>
    %125 = arith.addf %121, %124 : vector<8x1xf32>
    %126 = math.rsqrt %125 : vector<8x1xf32>
    %127 = vector.broadcast %126 : vector<8x1xf32> to vector<8x32xf32>
    %128 = arith.mulf %123, %127 : vector<8x32xf32>
    %129 = vector.broadcast %108 : vector<1x32xf32> to vector<8x32xf32>
    %130 = arith.mulf %128, %129 : vector<8x32xf32>
    %131 = vector.broadcast %110 : vector<1x32xf32> to vector<8x32xf32>
    %132 = arith.addf %130, %131 : vector<8x32xf32>
    %c1 = arith.constant 1 : index
    %c0_65 = arith.constant 0 : index
    %c0_66 = arith.constant 0 : index
    %133 = vector.load %arg5[%c1, %c0_65, %c0_66] : memref<2x32x96xf32, #tpu.memory_space<vmem>>, vector<1x32x96xf32>
    %134 = vector.shape_cast %133 : vector<1x32x96xf32> to vector<32x96xf32>
    %cst_67 = arith.constant dense<0.000000e+00> : vector<8x96xf32>
    %135 = tpu.matmul %132, %134, %cst_67 {dimension_numbers = #tpu.dot_dimension_numbers<[1], [0], [0], [1], [0, 0, 1, 1], [], []>} : vector<8x32xf32>, vector<32x96xf32>, vector<8x96xf32> -> vector<8x96xf32>
    %cst_68 = arith.constant 0.000000e+00 : f32
    %136 = vector.broadcast %cst_68 : f32 to vector<8x32xf32>
    %137 = vector.extract_strided_slice %135 {offsets = [0, 0], sizes = [8, 16], strides = [1, 1]} : vector<8x96xf32> to vector<8x16xf32>
    %138 = vector.extract_strided_slice %135 {offsets = [0, 32], sizes = [8, 16], strides = [1, 1]} : vector<8x96xf32> to vector<8x16xf32>
    %139 = vector.extract_strided_slice %135 {offsets = [0, 64], sizes = [8, 16], strides = [1, 1]} : vector<8x96xf32> to vector<8x16xf32>
    %cst_69 = arith.constant dense<0.000000e+00> : vector<8x8xf32>
    %140 = tpu.matmul %137, %138, %cst_69 {dimension_numbers = #tpu.dot_dimension_numbers<[1], [1], [0], [0], [0, 0, 1, 0], [], []>} : vector<8x16xf32>, vector<8x16xf32>, vector<8x8xf32> -> vector<8x8xf32>
    %cst_70 = arith.constant 2.500000e-01 : f32
    %141 = vector.broadcast %cst_70 : f32 to vector<8x8xf32>
    %142 = arith.mulf %140, %141 : vector<8x8xf32>
    %cst_71 = arith.constant dense<0xFF800000> : vector<8xf32>
    %143 = vector.multi_reduction <maximumf>, %142, %cst_71 [1] : vector<8x8xf32> to vector<8xf32>
    %144 = vector.shape_cast %143 : vector<8xf32> to vector<8x1xf32>
    %145 = vector.broadcast %144 : vector<8x1xf32> to vector<8x8xf32>
    %146 = arith.subf %142, %145 : vector<8x8xf32>
    %147 = math.exp %146 : vector<8x8xf32>
    %cst_72 = arith.constant dense<0.000000e+00> : vector<8xf32>
    %148 = vector.multi_reduction <add>, %147, %cst_72 [1] : vector<8x8xf32> to vector<8xf32>
    %149 = vector.shape_cast %148 : vector<8xf32> to vector<8x1xf32>
    %150 = tpu.reciprocal %149 {approx = true} : vector<8x1xf32> -> vector<8x1xf32>
    %151 = vector.broadcast %150 : vector<8x1xf32> to vector<8x8xf32>
    %152 = arith.mulf %147, %151 : vector<8x8xf32>
    %cst_73 = arith.constant dense<0.000000e+00> : vector<8x16xf32>
    %153 = tpu.matmul %152, %139, %cst_73 {dimension_numbers = #tpu.dot_dimension_numbers<[1], [0], [0], [1], [0, 0, 1, 1], [], []>} : vector<8x8xf32>, vector<8x16xf32>, vector<8x16xf32> -> vector<8x16xf32>
    %c1_74 = arith.constant 1 : index
    %c0_75 = arith.constant 0 : index
    %c0_76 = arith.constant 0 : index
    %154 = vector.load %arg6[%c1_74, %c0_75, %c0_76] : memref<2x32x32xf32, #tpu.memory_space<vmem>>, vector<1x16x32xf32>
    %155 = vector.shape_cast %154 : vector<1x16x32xf32> to vector<16x32xf32>
    %cst_77 = arith.constant dense<0.000000e+00> : vector<8x32xf32>
    %156 = tpu.matmul %153, %155, %cst_77 {dimension_numbers = #tpu.dot_dimension_numbers<[1], [0], [0], [1], [0, 0, 1, 1], [], []>} : vector<8x16xf32>, vector<16x32xf32>, vector<8x32xf32> -> vector<8x32xf32>
    %157 = arith.addf %136, %156 : vector<8x32xf32>
    %158 = vector.extract_strided_slice %135 {offsets = [0, 16], sizes = [8, 16], strides = [1, 1]} : vector<8x96xf32> to vector<8x16xf32>
    %159 = vector.extract_strided_slice %135 {offsets = [0, 48], sizes = [8, 16], strides = [1, 1]} : vector<8x96xf32> to vector<8x16xf32>
    %160 = vector.extract_strided_slice %135 {offsets = [0, 80], sizes = [8, 16], strides = [1, 1]} : vector<8x96xf32> to vector<8x16xf32>
    %cst_78 = arith.constant dense<0.000000e+00> : vector<8x8xf32>
    %161 = tpu.matmul %158, %159, %cst_78 {dimension_numbers = #tpu.dot_dimension_numbers<[1], [1], [0], [0], [0, 0, 1, 0], [], []>} : vector<8x16xf32>, vector<8x16xf32>, vector<8x8xf32> -> vector<8x8xf32>
    %cst_79 = arith.constant 2.500000e-01 : f32
    %162 = vector.broadcast %cst_79 : f32 to vector<8x8xf32>
    %163 = arith.mulf %161, %162 : vector<8x8xf32>
    %cst_80 = arith.constant dense<0xFF800000> : vector<8xf32>
    %164 = vector.multi_reduction <maximumf>, %163, %cst_80 [1] : vector<8x8xf32> to vector<8xf32>
    %165 = vector.shape_cast %164 : vector<8xf32> to vector<8x1xf32>
    %166 = vector.broadcast %165 : vector<8x1xf32> to vector<8x8xf32>
    %167 = arith.subf %163, %166 : vector<8x8xf32>
    %168 = math.exp %167 : vector<8x8xf32>
    %cst_81 = arith.constant dense<0.000000e+00> : vector<8xf32>
    %169 = vector.multi_reduction <add>, %168, %cst_81 [1] : vector<8x8xf32> to vector<8xf32>
    %170 = vector.shape_cast %169 : vector<8xf32> to vector<8x1xf32>
    %171 = tpu.reciprocal %170 {approx = true} : vector<8x1xf32> -> vector<8x1xf32>
    %172 = vector.broadcast %171 : vector<8x1xf32> to vector<8x8xf32>
    %173 = arith.mulf %168, %172 : vector<8x8xf32>
    %cst_82 = arith.constant dense<0.000000e+00> : vector<8x16xf32>
    %174 = tpu.matmul %173, %160, %cst_82 {dimension_numbers = #tpu.dot_dimension_numbers<[1], [0], [0], [1], [0, 0, 1, 1], [], []>} : vector<8x8xf32>, vector<8x16xf32>, vector<8x16xf32> -> vector<8x16xf32>
    %c1_83 = arith.constant 1 : index
    %c16_84 = arith.constant 16 : index
    %c0_85 = arith.constant 0 : index
    %175 = vector.load %arg6[%c1_83, %c16_84, %c0_85] : memref<2x32x32xf32, #tpu.memory_space<vmem>>, vector<1x16x32xf32>
    %176 = vector.shape_cast %175 : vector<1x16x32xf32> to vector<16x32xf32>
    %cst_86 = arith.constant dense<0.000000e+00> : vector<8x32xf32>
    %177 = tpu.matmul %174, %176, %cst_86 {dimension_numbers = #tpu.dot_dimension_numbers<[1], [0], [0], [1], [0, 0, 1, 1], [], []>} : vector<8x16xf32>, vector<16x32xf32>, vector<8x32xf32> -> vector<8x32xf32>
    %178 = arith.addf %157, %177 : vector<8x32xf32>
    %179 = arith.addf %132, %178 : vector<8x32xf32>
    %c1_87 = arith.constant 1 : index
    %c0_88 = arith.constant 0 : index
    %c0_89 = arith.constant 0 : index
    %180 = vector.load %arg7[%c1_87, %c0_88, %c0_89] : memref<2x1x32xf32, #tpu.memory_space<vmem>>, vector<1x1x32xf32>
    %181 = vector.shape_cast %180 : vector<1x1x32xf32> to vector<1x32xf32>
    %c1_90 = arith.constant 1 : index
    %c0_91 = arith.constant 0 : index
    %c0_92 = arith.constant 0 : index
    %182 = vector.load %arg8[%c1_90, %c0_91, %c0_92] : memref<2x1x32xf32, #tpu.memory_space<vmem>>, vector<1x1x32xf32>
    %183 = vector.shape_cast %182 : vector<1x1x32xf32> to vector<1x32xf32>
    %cst_93 = arith.constant dense<0.000000e+00> : vector<8xf32>
    %184 = vector.multi_reduction <add>, %179, %cst_93 [1] : vector<8x32xf32> to vector<8xf32>
    %185 = vector.shape_cast %184 : vector<8xf32> to vector<8x1xf32>
    %cst_94 = arith.constant 3.200000e+01 : f32
    %186 = vector.broadcast %cst_94 : f32 to vector<8x1xf32>
    %187 = arith.divf %185, %186 : vector<8x1xf32>
    %188 = vector.broadcast %187 : vector<8x1xf32> to vector<8x32xf32>
    %189 = arith.subf %179, %188 : vector<8x32xf32>
    %190 = arith.mulf %189, %189 : vector<8x32xf32>
    %cst_95 = arith.constant dense<0.000000e+00> : vector<8xf32>
    %191 = vector.multi_reduction <add>, %190, %cst_95 [1] : vector<8x32xf32> to vector<8xf32>
    %192 = vector.shape_cast %191 : vector<8xf32> to vector<8x1xf32>
    %cst_96 = arith.constant 3.200000e+01 : f32
    %193 = vector.broadcast %cst_96 : f32 to vector<8x1xf32>
    %194 = arith.divf %192, %193 : vector<8x1xf32>
    %195 = vector.broadcast %187 : vector<8x1xf32> to vector<8x32xf32>
    %196 = arith.subf %179, %195 : vector<8x32xf32>
    %cst_97 = arith.constant 9.99999974E-6 : f32
    %197 = vector.broadcast %cst_97 : f32 to vector<8x1xf32>
    %198 = arith.addf %194, %197 : vector<8x1xf32>
    %199 = math.rsqrt %198 : vector<8x1xf32>
    %200 = vector.broadcast %199 : vector<8x1xf32> to vector<8x32xf32>
    %201 = arith.mulf %196, %200 : vector<8x32xf32>
    %202 = vector.broadcast %181 : vector<1x32xf32> to vector<8x32xf32>
    %203 = arith.mulf %201, %202 : vector<8x32xf32>
    %204 = vector.broadcast %183 : vector<1x32xf32> to vector<8x32xf32>
    %205 = arith.addf %203, %204 : vector<8x32xf32>
    %c1_98 = arith.constant 1 : index
    %c0_99 = arith.constant 0 : index
    %c0_100 = arith.constant 0 : index
    %206 = vector.load %arg9[%c1_98, %c0_99, %c0_100] : memref<2x32x64xf32, #tpu.memory_space<vmem>>, vector<1x32x64xf32>
    %207 = vector.shape_cast %206 : vector<1x32x64xf32> to vector<32x64xf32>
    %cst_101 = arith.constant dense<0.000000e+00> : vector<8x64xf32>
    %208 = tpu.matmul %205, %207, %cst_101 {dimension_numbers = #tpu.dot_dimension_numbers<[1], [0], [0], [1], [0, 0, 1, 1], [], []>} : vector<8x32xf32>, vector<32x64xf32>, vector<8x64xf32> -> vector<8x64xf32>
    %c1_102 = arith.constant 1 : index
    %c0_103 = arith.constant 0 : index
    %c0_104 = arith.constant 0 : index
    %209 = vector.load %arg10[%c1_102, %c0_103, %c0_104] : memref<2x1x64xf32, #tpu.memory_space<vmem>>, vector<1x1x64xf32>
    %210 = vector.shape_cast %209 : vector<1x1x64xf32> to vector<1x64xf32>
    %211 = vector.broadcast %210 : vector<1x64xf32> to vector<8x64xf32>
    %212 = arith.addf %208, %211 : vector<8x64xf32>
    %cst_105 = arith.constant 0.000000e+00 : f32
    %213 = vector.broadcast %cst_105 : f32 to vector<8x64xf32>
    %214 = arith.maximumf %212, %213 : vector<8x64xf32>
    %c1_106 = arith.constant 1 : index
    %c0_107 = arith.constant 0 : index
    %c0_108 = arith.constant 0 : index
    %215 = vector.load %arg11[%c1_106, %c0_107, %c0_108] : memref<2x64x32xf32, #tpu.memory_space<vmem>>, vector<1x64x32xf32>
    %216 = vector.shape_cast %215 : vector<1x64x32xf32> to vector<64x32xf32>
    %cst_109 = arith.constant dense<0.000000e+00> : vector<8x32xf32>
    %217 = tpu.matmul %214, %216, %cst_109 {dimension_numbers = #tpu.dot_dimension_numbers<[1], [0], [0], [1], [0, 0, 1, 1], [], []>} : vector<8x64xf32>, vector<64x32xf32>, vector<8x32xf32> -> vector<8x32xf32>
    %c1_110 = arith.constant 1 : index
    %c0_111 = arith.constant 0 : index
    %c0_112 = arith.constant 0 : index
    %218 = vector.load %arg12[%c1_110, %c0_111, %c0_112] : memref<2x1x32xf32, #tpu.memory_space<vmem>>, vector<1x1x32xf32>
    %219 = vector.shape_cast %218 : vector<1x1x32xf32> to vector<1x32xf32>
    %220 = vector.broadcast %219 : vector<1x32xf32> to vector<8x32xf32>
    %221 = arith.addf %217, %220 : vector<8x32xf32>
    %222 = arith.addf %205, %221 : vector<8x32xf32>
    %c1_113 = arith.constant 1 : index
    %c0_114 = arith.constant 0 : index
    %c0_115 = arith.constant 0 : index
    %223 = vector.load %arg13[%c1_113, %c0_114, %c0_115] : memref<2x1x32xf32, #tpu.memory_space<vmem>>, vector<1x1x32xf32>
    %224 = vector.shape_cast %223 : vector<1x1x32xf32> to vector<1x32xf32>
    %c1_116 = arith.constant 1 : index
    %c0_117 = arith.constant 0 : index
    %c0_118 = arith.constant 0 : index
    %225 = vector.load %arg14[%c1_116, %c0_117, %c0_118] : memref<2x1x32xf32, #tpu.memory_space<vmem>>, vector<1x1x32xf32>
    %226 = vector.shape_cast %225 : vector<1x1x32xf32> to vector<1x32xf32>
    %cst_119 = arith.constant dense<0.000000e+00> : vector<8xf32>
    %227 = vector.multi_reduction <add>, %222, %cst_119 [1] : vector<8x32xf32> to vector<8xf32>
    %228 = vector.shape_cast %227 : vector<8xf32> to vector<8x1xf32>
    %cst_120 = arith.constant 3.200000e+01 : f32
    %229 = vector.broadcast %cst_120 : f32 to vector<8x1xf32>
    %230 = arith.divf %228, %229 : vector<8x1xf32>
    %231 = vector.broadcast %230 : vector<8x1xf32> to vector<8x32xf32>
    %232 = arith.subf %222, %231 : vector<8x32xf32>
    %233 = arith.mulf %232, %232 : vector<8x32xf32>
    %cst_121 = arith.constant dense<0.000000e+00> : vector<8xf32>
    %234 = vector.multi_reduction <add>, %233, %cst_121 [1] : vector<8x32xf32> to vector<8xf32>
    %235 = vector.shape_cast %234 : vector<8xf32> to vector<8x1xf32>
    %cst_122 = arith.constant 3.200000e+01 : f32
    %236 = vector.broadcast %cst_122 : f32 to vector<8x1xf32>
    %237 = arith.divf %235, %236 : vector<8x1xf32>
    %238 = vector.broadcast %230 : vector<8x1xf32> to vector<8x32xf32>
    %239 = arith.subf %222, %238 : vector<8x32xf32>
    %cst_123 = arith.constant 9.99999974E-6 : f32
    %240 = vector.broadcast %cst_123 : f32 to vector<8x1xf32>
    %241 = arith.addf %237, %240 : vector<8x1xf32>
    %242 = math.rsqrt %241 : vector<8x1xf32>
    %243 = vector.broadcast %242 : vector<8x1xf32> to vector<8x32xf32>
    %244 = arith.mulf %239, %243 : vector<8x32xf32>
    %245 = vector.broadcast %224 : vector<1x32xf32> to vector<8x32xf32>
    %246 = arith.mulf %244, %245 : vector<8x32xf32>
    %247 = vector.broadcast %226 : vector<1x32xf32> to vector<8x32xf32>
    %248 = arith.addf %246, %247 : vector<8x32xf32>
    %cst_124 = arith.constant dense<0xFF800000> : vector<32xf32>
    %249 = vector.multi_reduction <maximumf>, %248, %cst_124 [0] : vector<8x32xf32> to vector<32xf32>
    %250 = vector.shape_cast %249 : vector<32xf32> to vector<1x32xf32>
    %c0_125 = arith.constant 0 : index
    %c0_126 = arith.constant 0 : index
    %251 = vector.load %arg15[%c0_125, %c0_126] : memref<32x32xf32, #tpu.memory_space<vmem>>, vector<32x32xf32>
    %cst_127 = arith.constant dense<0.000000e+00> : vector<1x32xf32>
    %252 = tpu.matmul %250, %251, %cst_127 {dimension_numbers = #tpu.dot_dimension_numbers<[1], [0], [0], [1], [0, 0, 1, 1], [], []>} : vector<1x32xf32>, vector<32x32xf32>, vector<1x32xf32> -> vector<1x32xf32>
    %c0_128 = arith.constant 0 : index
    %c0_129 = arith.constant 0 : index
    %253 = vector.load %arg16[%c0_128, %c0_129] : memref<32x32xf32, #tpu.memory_space<vmem>>, vector<32x32xf32>
    %cst_130 = arith.constant dense<0.000000e+00> : vector<8x32xf32>
    %254 = tpu.matmul %248, %253, %cst_130 {dimension_numbers = #tpu.dot_dimension_numbers<[1], [0], [0], [1], [0, 0, 1, 1], [], []>} : vector<8x32xf32>, vector<32x32xf32>, vector<8x32xf32> -> vector<8x32xf32>
    %255 = vector.broadcast %252 : vector<1x32xf32> to vector<8x32xf32>
    %256 = arith.addf %254, %255 : vector<8x32xf32>
    %c0_131 = arith.constant 0 : index
    %c0_132 = arith.constant 0 : index
    %257 = vector.load %arg17[%c0_131, %c0_132] : memref<32x32xf32, #tpu.memory_space<vmem>>, vector<32x32xf32>
    %cst_133 = arith.constant dense<0.000000e+00> : vector<8x32xf32>
    %258 = tpu.matmul %256, %257, %cst_133 {dimension_numbers = #tpu.dot_dimension_numbers<[1], [0], [0], [1], [0, 0, 1, 1], [], []>} : vector<8x32xf32>, vector<32x32xf32>, vector<8x32xf32> -> vector<8x32xf32>
    %c0_134 = arith.constant 0 : index
    %c0_135 = arith.constant 0 : index
    %259 = vector.load %arg18[%c0_134, %c0_135] : memref<32x32xf32, #tpu.memory_space<vmem>>, vector<32x32xf32>
    %cst_136 = arith.constant dense<0.000000e+00> : vector<8x32xf32>
    %260 = tpu.matmul %256, %259, %cst_136 {dimension_numbers = #tpu.dot_dimension_numbers<[1], [0], [0], [1], [0, 0, 1, 1], [], []>} : vector<8x32xf32>, vector<32x32xf32>, vector<8x32xf32> -> vector<8x32xf32>
    %cst_137 = arith.constant dense<0.000000e+00> : vector<8x8xf32>
    %261 = tpu.matmul %258, %260, %cst_137 {dimension_numbers = #tpu.dot_dimension_numbers<[1], [1], [0], [0], [0, 0, 1, 0], [], []>} : vector<8x32xf32>, vector<8x32xf32>, vector<8x8xf32> -> vector<8x8xf32>
    %262 = tpu.iota {dimensions = array<i32: 0>} : vector<8x8xi32>
    %263 = tpu.iota {dimensions = array<i32: 1>} : vector<8x8xi32>
    %264 = arith.index_cast %arg0 : i32 to index
    %c0_138 = arith.constant 0 : index
    %265 = memref.load %arg1[%264, %c0_138] : memref<2x2xi32, #tpu.memory_space<smem>>
    %266 = arith.index_cast %arg0 : i32 to index
    %c1_139 = arith.constant 1 : index
    %267 = memref.load %arg1[%266, %c1_139] : memref<2x2xi32, #tpu.memory_space<smem>>
    %268 = arith.cmpi eq, %262, %263 : vector<8x8xi32>
    %269 = vector.broadcast %265 : i32 to vector<8x8xi32>
    %270 = arith.cmpi eq, %262, %269 : vector<8x8xi32>
    %271 = vector.broadcast %267 : i32 to vector<8x8xi32>
    %272 = arith.cmpi eq, %263, %271 : vector<8x8xi32>
    %273 = arith.andi %270, %272 : vector<8x8xi1>
    %274 = arith.ori %268, %273 : vector<8x8xi1>
    %275 = vector.broadcast %267 : i32 to vector<8x8xi32>
    %276 = arith.cmpi eq, %262, %275 : vector<8x8xi32>
    %277 = vector.broadcast %265 : i32 to vector<8x8xi32>
    %278 = arith.cmpi eq, %263, %277 : vector<8x8xi32>
    %279 = arith.andi %276, %278 : vector<8x8xi1>
    %280 = arith.ori %274, %279 : vector<8x8xi1>
    %cst_140 = arith.constant 0xFF800000 : f32
    %281 = vector.broadcast %cst_140 : f32 to vector<8x8xf32>
    %282 = arith.select %280, %281, %261 : vector<8x8xi1>, vector<8x8xf32>
    %283 = vector.shape_cast %282 : vector<8x8xf32> to vector<1x8x8xf32>
    %cst_141 = arith.constant dense<0xFF800000> : vector<1xf32>
    %284 = vector.multi_reduction <maximumf>, %283, %cst_141 [1, 2] : vector<1x8x8xf32> to vector<1xf32>
    %285 = vector.shape_cast %284 : vector<1xf32> to vector<1x1x1xf32>
    %286 = vector.extract %285[0, 0, 0] : f32 from vector<1x1x1xf32>
    %287 = vector.broadcast %286 : f32 to vector<1x1xf32>
    %288 = vector.broadcast %287 : vector<1x1xf32> to vector<8x8xf32>
    %289 = arith.subf %282, %288 : vector<8x8xf32>
    %290 = math.exp %289 : vector<8x8xf32>
    %291 = vector.shape_cast %290 : vector<8x8xf32> to vector<1x8x8xf32>
    %cst_142 = arith.constant dense<0.000000e+00> : vector<1xf32>
    %292 = vector.multi_reduction <add>, %291, %cst_142 [1, 2] : vector<1x8x8xf32> to vector<1xf32>
    %293 = vector.shape_cast %292 : vector<1xf32> to vector<1x1x1xf32>
    %294 = vector.extract %293[0, 0, 0] : f32 from vector<1x1x1xf32>
    %295 = vector.broadcast %294 : f32 to vector<1x1xf32>
    %296 = vector.broadcast %287 : vector<1x1xf32> to vector<8x8xf32>
    %297 = arith.subf %282, %296 : vector<8x8xf32>
    %298 = math.log %295 : vector<1x1xf32>
    %299 = vector.broadcast %298 : vector<1x1xf32> to vector<8x8xf32>
    %300 = arith.subf %297, %299 : vector<8x8xf32>
    %c0_143 = arith.constant 0 : index
    %c0_144 = arith.constant 0 : index
    %c0_145 = arith.constant 0 : index
    %301 = vector.load %arg19[%c0_143, %c0_144, %c0_145] : memref<1x8x8xf32, #tpu.memory_space<vmem>>, vector<1x8x8xf32>
    %302 = vector.shape_cast %301 : vector<1x8x8xf32> to vector<8x8xf32>
    %303 = vector.shape_cast %300 : vector<8x8xf32> to vector<1x8x8xf32>
    tpu.vector_store %arg19[%c0_143, %c0_144, %c0_145], %303 {strides = array<i32>} : memref<1x8x8xf32, #tpu.memory_space<vmem>>, vector<1x8x8xf32>,
    return
  }
  func.func @transform_0(%arg0: i32, %arg1: memref<2x2xi32, #tpu.memory_space<smem>>) -> (i32, i32, i32) {
    %c0_i32 = arith.constant 0 : i32
    %c0_i32_0 = arith.constant 0 : i32
    %c0_i32_1 = arith.constant 0 : i32
    return %arg0, %c0_i32, %c0_i32_0 : i32, i32, i32
  }
  func.func @transform_1(%arg0: i32, %arg1: memref<2x2xi32, #tpu.memory_space<smem>>) -> (i32, i32, i32) {
    %c0_i32 = arith.constant 0 : i32
    %c0_i32_0 = arith.constant 0 : i32
    %c0_i32_1 = arith.constant 0 : i32
    return %arg0, %c0_i32, %c0_i32_0 : i32, i32, i32
  }
  func.func @transform_2(%arg0: i32, %arg1: memref<2x2xi32, #tpu.memory_space<smem>>) -> (i32, i32) {
    %c0_i32 = arith.constant 0 : i32
    %c0_i32_0 = arith.constant 0 : i32
    %c0_i32_1 = arith.constant 0 : i32
    return %c0_i32, %c0_i32_0 : i32, i32
  }
  func.func @transform_3(%arg0: i32, %arg1: memref<2x2xi32, #tpu.memory_space<smem>>) -> (i32, i32, i32) {
    %c0_i32 = arith.constant 0 : i32
    %c0_i32_0 = arith.constant 0 : i32
    %c0_i32_1 = arith.constant 0 : i32
    %c0_i32_2 = arith.constant 0 : i32
    return %c0_i32, %c0_i32_0, %c0_i32_1 : i32, i32, i32
  }
  func.func @transform_4(%arg0: i32, %arg1: memref<2x2xi32, #tpu.memory_space<smem>>) -> (i32, i32, i32) {
    %c0_i32 = arith.constant 0 : i32
    %c0_i32_0 = arith.constant 0 : i32
    %c0_i32_1 = arith.constant 0 : i32
    %c0_i32_2 = arith.constant 0 : i32
    return %c0_i32, %c0_i32_0, %c0_i32_1 : i32, i32, i32
  }
  func.func @transform_5(%arg0: i32, %arg1: memref<2x2xi32, #tpu.memory_space<smem>>) -> (i32, i32, i32) {
    %c0_i32 = arith.constant 0 : i32
    %c0_i32_0 = arith.constant 0 : i32
    %c0_i32_1 = arith.constant 0 : i32
    %c0_i32_2 = arith.constant 0 : i32
    return %c0_i32, %c0_i32_0, %c0_i32_1 : i32, i32, i32
  }
  func.func @transform_6(%arg0: i32, %arg1: memref<2x2xi32, #tpu.memory_space<smem>>) -> (i32, i32, i32) {
    %c0_i32 = arith.constant 0 : i32
    %c0_i32_0 = arith.constant 0 : i32
    %c0_i32_1 = arith.constant 0 : i32
    %c0_i32_2 = arith.constant 0 : i32
    return %c0_i32, %c0_i32_0, %c0_i32_1 : i32, i32, i32
  }
  func.func @transform_7(%arg0: i32, %arg1: memref<2x2xi32, #tpu.memory_space<smem>>) -> (i32, i32, i32) {
    %c0_i32 = arith.constant 0 : i32
    %c0_i32_0 = arith.constant 0 : i32
    %c0_i32_1 = arith.constant 0 : i32
    %c0_i32_2 = arith.constant 0 : i32
    return %c0_i32, %c0_i32_0, %c0_i32_1 : i32, i32, i32
  }
  func.func @transform_8(%arg0: i32, %arg1: memref<2x2xi32, #tpu.memory_space<smem>>) -> (i32, i32, i32) {
    %c0_i32 = arith.constant 0 : i32
    %c0_i32_0 = arith.constant 0 : i32
    %c0_i32_1 = arith.constant 0 : i32
    %c0_i32_2 = arith.constant 0 : i32
    return %c0_i32, %c0_i32_0, %c0_i32_1 : i32, i32, i32
  }
  func.func @transform_9(%arg0: i32, %arg1: memref<2x2xi32, #tpu.memory_space<smem>>) -> (i32, i32, i32) {
    %c0_i32 = arith.constant 0 : i32
    %c0_i32_0 = arith.constant 0 : i32
    %c0_i32_1 = arith.constant 0 : i32
    %c0_i32_2 = arith.constant 0 : i32
    return %c0_i32, %c0_i32_0, %c0_i32_1 : i32, i32, i32
  }
  func.func @transform_10(%arg0: i32, %arg1: memref<2x2xi32, #tpu.memory_space<smem>>) -> (i32, i32, i32) {
    %c0_i32 = arith.constant 0 : i32
    %c0_i32_0 = arith.constant 0 : i32
    %c0_i32_1 = arith.constant 0 : i32
    %c0_i32_2 = arith.constant 0 : i32
    return %c0_i32, %c0_i32_0, %c0_i32_1 : i32, i32, i32
  }
  func.func @transform_11(%arg0: i32, %arg1: memref<2x2xi32, #tpu.memory_space<smem>>) -> (i32, i32, i32) {
    %c0_i32 = arith.constant 0 : i32
    %c0_i32_0 = arith.constant 0 : i32
    %c0_i32_1 = arith.constant 0 : i32
    %c0_i32_2 = arith.constant 0 : i32
    return %c0_i32, %c0_i32_0, %c0_i32_1 : i32, i32, i32
  }
  func.func @transform_12(%arg0: i32, %arg1: memref<2x2xi32, #tpu.memory_space<smem>>) -> (i32, i32, i32) {
    %c0_i32 = arith.constant 0 : i32
    %c0_i32_0 = arith.constant 0 : i32
    %c0_i32_1 = arith.constant 0 : i32
    %c0_i32_2 = arith.constant 0 : i32
    return %c0_i32, %c0_i32_0, %c0_i32_1 : i32, i32, i32
  }
  func.func @transform_13(%arg0: i32, %arg1: memref<2x2xi32, #tpu.memory_space<smem>>) -> (i32, i32) {
    %c0_i32 = arith.constant 0 : i32
    %c0_i32_0 = arith.constant 0 : i32
    %c0_i32_1 = arith.constant 0 : i32
    return %c0_i32, %c0_i32_0 : i32, i32
  }
  func.func @transform_14(%arg0: i32, %arg1: memref<2x2xi32, #tpu.memory_space<smem>>) -> (i32, i32) {
    %c0_i32 = arith.constant 0 : i32
    %c0_i32_0 = arith.constant 0 : i32
    %c0_i32_1 = arith.constant 0 : i32
    return %c0_i32, %c0_i32_0 : i32, i32
  }
  func.func @transform_15(%arg0: i32, %arg1: memref<2x2xi32, #tpu.memory_space<smem>>) -> (i32, i32) {
    %c0_i32 = arith.constant 0 : i32
    %c0_i32_0 = arith.constant 0 : i32
    %c0_i32_1 = arith.constant 0 : i32
    return %c0_i32, %c0_i32_0 : i32, i32
  }
  func.func @transform_16(%arg0: i32, %arg1: memref<2x2xi32, #tpu.memory_space<smem>>) -> (i32, i32) {
    %c0_i32 = arith.constant 0 : i32
    %c0_i32_0 = arith.constant 0 : i32
    %c0_i32_1 = arith.constant 0 : i32
    return %c0_i32, %c0_i32_0 : i32, i32
  }
  func.func @transform_17(%arg0: i32, %arg1: memref<2x2xi32, #tpu.memory_space<smem>>) -> (i32, i32, i32) {
    %c0_i32 = arith.constant 0 : i32
    %c0_i32_0 = arith.constant 0 : i32
    %c0_i32_1 = arith.constant 0 : i32
    return %arg0, %c0_i32, %c0_i32_0 : i32, i32, i32
  }
}

</mosaic_0001>

<bundles_post_ra>
// kernel: tpu_custom_call.1
= control target key start
LH: loop header
LB: loop body
LE: loop exit
PB: predicated region body
PF: predicated region fallthrough
CT: control target
= control target key end

     0   :  { %s4771_s0 = inlined_call_operand.hbm [shape: s32[2,2], index: 0, kind: input, shape index: {}]   ;;  %s4772_s1 = inlined_call_operand.vmem [shape: f32[2,8,2], index: 1, kind: input, shape index: {}]   ;;  %s4773_s2 = inlined_call_operand.hbm [shape: f32[2,8,32], index: 2, kind: input, shape index: {}]   ;;  %s4774_s3 = inlined_call_operand.hbm [shape: f32[2,32], index: 3, kind: input, shape index: {}]   ;;  %s4775_s4 = inlined_call_operand.vmem [shape: f32[2,32,96], index: 4, kind: input, shape index: {}]   ;;  %s4776_s5 = inlined_call_operand.vmem [shape: f32[2,32,32], index: 5, kind: input, shape index: {}]   ;;  %s4777_s6 = inlined_call_operand.hbm [shape: f32[2,1,32], index: 6, kind: input, shape index: {}]   ;;  %s4778_s7 = inlined_call_operand.hbm [shape: f32[2,1,32], index: 7, kind: input, shape index: {}]   ;;  %s4779_s8 = inlined_call_operand.vmem [shape: f32[2,32,64], index: 8, kind: input, shape index: {}]   ;;  %s4780_s9 = inlined_call_operand.hbm [shape: f32[2,1,64], index: 9, kind: input, shape index: {}]   ;;  %s4781_s10 = inlined_call_operand.vmem [shape: f32[2,64,32], index: 10, kind: input, shape index: {}]   ;;  %s4782_s11 = inlined_call_operand.hbm [shape: f32[2,1,32], index: 11, kind: input, shape index: {}]   ;;  %s4783_s12 = inlined_call_operand.hbm [shape: f32[2,1,32], index: 12, kind: input, shape index: {}]   ;;  %s4784_s13 = inlined_call_operand.vmem [shape: f32[2,1,32], index: 13, kind: input, shape index: {}]   ;;  %s4785_s14 = inlined_call_operand.vmem [shape: f32[32,32], index: 14, kind: input, shape index: {}]   ;;  %s4786_s15 = inlined_call_operand.vmem [shape: f32[32,32], index: 15, kind: input, shape index: {}]   ;;  %s4787_s16 = inlined_call_operand.hbm [shape: f32[32,32], index: 16, kind: input, shape index: {}]   ;;  %s4788_s17 = inlined_call_operand.hbm [shape: f32[32,32], index: 17, kind: input, shape index: {}]   ;;  %s4789_s18 = inlined_call_operand.hbm [shape: f32[2,8,8], index: 18, kind: output, shape index: {}]  }
   0x1   :  { %4810 = sst [smem:[#allocation27_spill]] %s4771_s0 }
   0x2   :  { %4811 = sst [smem:[#allocation28_spill]] %s4772_s1  ;;  %s4823_s29 = sld [smem:[#allocation27_spill]] }
   0x3   :  { %4812 = sst [smem:[#allocation29_spill]] %s4773_s2 }
   0x4   :  { %4813 = sst [smem:[#allocation30_spill]] %s4774_s3 }
   0x5   :  { %4814 = sst [smem:[#allocation31_spill]] %s4775_s4 }
   0x6   :  { %4815 = sst [smem:[#allocation32_spill]] %s4777_s6 }
   0x7   :  { %4816 = sst [smem:[#allocation33_spill]] %s4778_s7 }
   0x8   :  { %4817 = sst [smem:[#allocation34_spill]] %s4780_s9 }
   0x9   :  { %4818 = sst [smem:[#allocation35_spill]] %s4781_s10  ;;  %s3572_s10 = scalar_lea.hbm %s4823_s29, 32 }
   0xa   :  { %4819 = sst [smem:[#allocation36_spill]] %s4784_s13  ;;  %p3573_p0 = scmp.ne.s32.totalorder %s4823_s29, %s3572_s10 }
   0xb   :  { %4820 = sst [smem:[#allocation37_spill]] %s4785_s14  ;;  %p3576_p1 = scmp.lt.u32.totalorder %s3572_s10, %s4823_s29 }
   0xc   :  { %4821 = sst [smem:[#allocation38_spill]] %s4786_s15 }
   0xd   :  { %4822 = sst [smem:[#allocation39_spill]] %s4789_s18  ;;  %p3578_p2 = pnand %p3576_p1, %p3573_p0 }
   0xf   :  { %3581 = shalt.err (!%p3578_p2)  }
  0x10   :  { %s3922_s20 = smov [#allocation3]  }
  0x11   :  { %24 = dma.hbm_to_smem %s4823_s29, 32, %s3922_s20, [#allocation2] }
  0x12   :  { %3880 = dma.done.wait [#allocation2], 32 }
  0x13   :  { %3881 = vsyncadd [#allocation2], 4294967264 }
  0x14   :  { %26 = sfence }
  0x15   :  { %27 = vsyncpa [#allocation5], 0 }
  0x16   :  { %29 = vsyncpa [#allocation5 + $0x1], 0 }
  0x17   :  { %30 = vsyncpa [#allocation8], 0 }
  0x18   :  { %31 = vsyncpa [#allocation11], 0 }
  0x19   :  { %32 = vsyncpa [#allocation14], 0 }
  0x1a   :  { %33 = vsyncpa [#allocation17], 0 }
  0x1b   :  { %34 = vsyncpa [#allocation6], 0 }
  0x1c   :  { %36 = vsyncpa [#allocation6 + $0x1], 0  ;;  %s4054_s2 = smov 0   ;;  %s4056_s10 = smov 0  }
  0x1d   :  { %s4058_s23 = smov 0   ;;  %s4060_s24 = smov 0  }
  0x1e LB: > { %s3923_s25 = smov [#allocation7]   ;;  %s4075_s27 = sadd.s32 4294967295, %s3920_s24   ;;  %s3920_s24 = sphi %s4060_s24, %s4867_s24   ;;  %s3916_s23 = sphi %s4058_s23, %s4866_s23   ;;  %s3912_s10 = sphi %s4056_s10, %s4865_s10   ;;  %s3908_s2 = sphi %s4054_s2, %s4864_s2  }
  0x1f   : > { %s453_s26 = sshll.u32 %s3923_s25, 4  ;;  %p2935_p3 = scmp.ge.s32.totalorder %s3920_s24, 1  ;;  %s454_s26 = int_to_ptr.vmem [resolvable:$true] %s453_s26 }
  0x20   : > { %p4795_p4 = scmp.eq.s32.totalorder %s4075_s27, 0  ;;  %p440_p5 = scmp.lt.s32.totalorder %s3920_s24, 3 }
  0x21   : > { %s3924_s29 = smov [#allocation10]   ;;  %s3925_s19 = smov [#allocation13]  }
  0x22   : > { %p4080_p6 = pnand %p2935_p3, %p440_p5  ;;  %s482_s30 = sshll.u32 %s3924_s29, 4  ;;  %s4093_s30 = int_to_ptr.vmem [resolvable:$true] %s482_s30 }
  0x23   : > { %s514_s1 = sshll.u32 %s3925_s19, 4  ;;  %s4826_s3 = sld [smem:[#allocation30_spill]]  ;;  %s4095_s1 = int_to_ptr.vmem [resolvable:$true] %s514_s1 }
  0x24   : > { %s4824_s28 = scalar_select %p4080_p6, 1, 0 }
  0x25   : > { %p3436_p8 = pneg %p4080_p6 }
  0x27   : > { %p4089_p9 = pnand %p3436_p8, %p4795_p4 }
  0x29   : > { %s3582_s22 = scalar_lea.hbm %s4826_s3, 32  ;;  %p4105_p11 = pneg %p4089_p9 }
  0x2a   : > { %p3583_p10 = scmp.ne.s32.totalorder %s4826_s3, %s3582_s22  ;;  %p3589_p0 = scmp.lt.u32.totalorder %s3582_s22, %s4826_s3 }
  0x2c   : > { %p3585_p12 = pnand %p4105_p11, %p3583_p10 }
  0x2e   : > { %p3586_p13 = pneg %p3585_p12 }
  0x30   : > { %p3591_p1 = pnand %p3589_p0, %p3586_p13 }
  0x32   : > { %3594 = shalt.err (!%p3591_p1)
}
  0x33   : > { %s3595_s20 = scalar_lea.vmem %s454_s26, 32  ;;  %p3603_p8 = scmp.lt.s32.totalorder %s454_s26, %s454_s26 }
  0x34   : > { %p3596_p2 = scmp.ne.s32.totalorder %s454_s26, %s3595_s20  ;;  %p3604_p7 = scmp.lt.s32.totalorder %s3595_s20, %s3595_s20 }
  0x36   : > { %p3598_p3 = pnand %p3596_p2, %p4105_p11  ;;  %p3605_p4 = por %p3604_p7, %p3603_p8 }
  0x38   : > { %p3599_p5 = pneg %p3598_p3 }
  0x3a   : > { %p3606_p6 = pnand %p3605_p4, %p3599_p5 }
  0x3c   : > { %3609 = shalt.err (!%p3606_p6)
}
  0x3d   : > { %3439 = dma.hbm_to_vmem [thread:$0]  (!%p4089_p9), %s4826_s3, 32, %s454_s26, [#allocation8]  }
  0x3e   : > { %s4828_s7 = sld [smem:[#allocation33_spill]] }
  0x44   : > { %s3610_s25 = scalar_lea.hbm %s4828_s7, 32 }
  0x45   : > { %p3611_p10 = scmp.ne.s32.totalorder %s4828_s7, %s3610_s25  ;;  %p3617_p4 = scmp.lt.u32.totalorder %s3610_s25, %s4828_s7 }
  0x47   : > { %p3613_p12 = pnand %p3611_p10, %p4105_p11 }
  0x49   : > { %p3614_p7 = pneg %p3613_p12 }
  0x4b   : > { %p3619_p6 = pnand %p3617_p4, %p3614_p7 }
  0x4d   : > { %3622 = shalt.err (!%p3619_p6)
}
  0x4e   : > { %s3623_s26 = scalar_lea.vmem %s4093_s30, 32  ;;  %p3631_p2 = scmp.lt.s32.totalorder %s4093_s30, %s4093_s30 }
  0x4f   : > { %p3624_p13 = scmp.ne.s32.totalorder %s4093_s30, %s3623_s26  ;;  %p3632_p3 = scmp.lt.s32.totalorder %s3623_s26, %s3623_s26 }
  0x51   : > { %p3626_p0 = pnand %p3624_p13, %p4105_p11  ;;  %p3633_p5 = por %p3632_p3, %p3631_p2 }
  0x53   : > { %p3627_p1 = pneg %p3626_p0 }
  0x55   : > { %p3634_p8 = pnand %p3633_p5, %p3627_p1 }
  0x57   : > { %3637 = shalt.err (!%p3634_p8)
}
  0x58   : > { %s4799_s14 = smov 16   ;;  %s4801_s13 = smov 1  }
  0x59   : > { %3445 = dma.hbm_to_vmem [thread:$0]  (!%p4089_p9), %s4828_s7, 32, %s4093_s30, [#allocation11], %s4799_s14, %s4799_s14, %s4801_s13  }
  0x5a   : > { %s3638_s25 = scalar_lea.hbm %s4782_s11, 32 }
  0x5b   : > { %p3639_p10 = scmp.ne.s32.totalorder %s4782_s11, %s3638_s25  ;;  %p3645_p4 = scmp.lt.u32.totalorder %s3638_s25, %s4782_s11 }
  0x5d   : > { %p3641_p12 = pnand %p3639_p10, %p4105_p11 }
  0x5f   : > { %p3642_p7 = pneg %p3641_p12 }
  0x61   : > { %p3647_p6 = pnand %p3645_p4, %p3642_p7 }
  0x63   : > { %3650 = shalt.err (!%p3647_p6)
}
  0x64   : > { %s3651_s30 = scalar_lea.vmem %s4095_s1, 32  ;;  %p3659_p2 = scmp.lt.s32.totalorder %s4095_s1, %s4095_s1 }
  0x65   : > { %p3652_p13 = scmp.ne.s32.totalorder %s4095_s1, %s3651_s30  ;;  %p3660_p3 = scmp.lt.s32.totalorder %s3651_s30, %s3651_s30 }
  0x67   : > { %p3654_p0 = pnand %p3652_p13, %p4105_p11  ;;  %p3661_p5 = por %p3660_p3, %p3659_p2 }
  0x69   : > { %p3655_p1 = pneg %p3654_p0 }
  0x6b   : > { %p3662_p8 = pnand %p3661_p5, %p3655_p1 }
  0x6d   : > { %3665 = shalt.err (!%p3662_p8)
}
  0x6e   : > { %3451 = dma.hbm_to_vmem [thread:$0]  (!%p4089_p9), %s4782_s11, 32, %s4095_s1, [#allocation14], %s4799_s14, %s4799_s14, %s4801_s13  }
  0x6f   : > { %s3928_s21 = smov [#allocation16]   ;;  %s3666_s19 = scalar_lea.hbm %s4787_s16, 512 }
  0x70   : > { %s549_s15 = sshll.u32 %s3928_s21, 4  ;;  %p3667_p10 = scmp.ne.s32.totalorder %s4787_s16, %s3666_s19  ;;  %s550_s15 = int_to_ptr.vmem [resolvable:$true] %s549_s15 }
  0x71   : > { %p3673_p4 = scmp.lt.u32.totalorder %s3666_s19, %s4787_s16 }
  0x72   : > { %p3669_p12 = pnand %p3667_p10, %p4105_p11 }
  0x74   : > { %p3670_p7 = pneg %p3669_p12 }
  0x76   : > { %p3675_p6 = pnand %p3673_p4, %p3670_p7 }
  0x78   : > { %3678 = shalt.err (!%p3675_p6)
}
  0x79   : > { %s3679_s1 = scalar_lea.vmem %s550_s15, 512  ;;  %p3687_p2 = scmp.lt.s32.totalorder %s550_s15, %s550_s15 }
  0x7a   : > { %p3680_p13 = scmp.ne.s32.totalorder %s550_s15, %s3679_s1  ;;  %p3688_p3 = scmp.lt.s32.totalorder %s3679_s1, %s3679_s1 }
  0x7c   : > { %p3682_p0 = pnand %p3680_p13, %p4105_p11  ;;  %p3689_p5 = por %p3688_p3, %p3687_p2 }
  0x7e   : > { %p3683_p1 = pneg %p3682_p0 }
  0x80   : > { %p3690_p8 = pnand %p3689_p5, %p3683_p1 }
  0x82   : > { %3693 = shalt.err (!%p3690_p8)
}
  0x83   : > { %s4803_s3 = smov 128   ;;  %s4804_s18 = smov 8  }
  0x84   : > { %3457 = dma.hbm_to_vmem [thread:$0]  (!%p4089_p9), %s4787_s16, 512, %s550_s15, [#allocation17], %s4803_s3, %s4803_s3, %s4804_s18  }
  0x85   : > { %s3931_s22 = smov [#allocation9]   ;;  %s3932_s19 = smov [#allocation12]  }
  0x86   : > { %s469_s25 = sshll.u32 %s3931_s22, 4  ;;  %s498_s20 = sshll.u32 %s3932_s19, 4  ;;  %s470_s25 = int_to_ptr.vmem [resolvable:$true] %s469_s25  ;;  %s4194_s20 = int_to_ptr.vmem [resolvable:$true] %s498_s20 }
  0x87   : > { %s4829_s6 = sld [smem:[#allocation32_spill]] }
  0x8d   : > { %s3694_s1 = scalar_lea.hbm %s4829_s6, 32 }
  0x8e   : > { %p3695_p10 = scmp.ne.s32.totalorder %s4829_s6, %s3694_s1  ;;  %p3701_p4 = scmp.lt.u32.totalorder %s3694_s1, %s4829_s6 }
  0x90   : > { %p3697_p12 = pnand %p3695_p10, %p4105_p11 }
  0x92   : > { %p3698_p7 = pneg %p3697_p12 }
  0x94   : > { %p3703_p6 = pnand %p3701_p4, %p3698_p7 }
  0x96   : > { %3706 = shalt.err (!%p3703_p6)
}
  0x97   : > { %s3707_s21 = scalar_lea.vmem %s470_s25, 32  ;;  %p3715_p2 = scmp.lt.s32.totalorder %s470_s25, %s470_s25 }
  0x98   : > { %p3708_p13 = scmp.ne.s32.totalorder %s470_s25, %s3707_s21  ;;  %p3716_p3 = scmp.lt.s32.totalorder %s3707_s21, %s3707_s21 }
  0x9a   : > { %p3710_p0 = pnand %p3708_p13, %p4105_p11  ;;  %p3717_p5 = por %p3716_p3, %p3715_p2 }
  0x9c   : > { %p3711_p1 = pneg %p3710_p0 }
  0x9e   : > { %p3718_p8 = pnand %p3717_p5, %p3711_p1 }
  0xa0   : > { %3721 = shalt.err (!%p3718_p8)
}
  0xa1   : > { %s4830_s14 = smov 1   ;;  %s4831_s13 = smov 16  }
  0xa2   : > { %3442 = dma.hbm_to_vmem [thread:$0]  (!%p4089_p9), %s4829_s6, 32, %s470_s25, [#allocation8], %s4831_s13, %s4831_s13, %s4830_s14  }
  0xa3   : > { %s4832_s9 = sld [smem:[#allocation34_spill]] }
  0xa9   : > { %s3722_s1 = scalar_lea.hbm %s4832_s9, 32 }
  0xaa   : > { %p3723_p10 = scmp.ne.s32.totalorder %s4832_s9, %s3722_s1  ;;  %p3729_p4 = scmp.lt.u32.totalorder %s3722_s1, %s4832_s9 }
  0xac   : > { %p3725_p12 = pnand %p3723_p10, %p4105_p11 }
  0xae   : > { %p3726_p7 = pneg %p3725_p12 }
  0xb0   : > { %p3731_p6 = pnand %p3729_p4, %p3726_p7 }
  0xb2   : > { %3734 = shalt.err (!%p3731_p6)
}
  0xb3   : > { %s3735_s25 = scalar_lea.vmem %s4194_s20, 32  ;;  %p3743_p2 = scmp.lt.s32.totalorder %s4194_s20, %s4194_s20 }
  0xb4   : > { %p3736_p13 = scmp.ne.s32.totalorder %s4194_s20, %s3735_s25  ;;  %p3744_p3 = scmp.lt.s32.totalorder %s3735_s25, %s3735_s25 }
  0xb6   : > { %p3738_p0 = pnand %p3736_p13, %p4105_p11  ;;  %p3745_p5 = por %p3744_p3, %p3743_p2 }
  0xb8   : > { %p3739_p1 = pneg %p3738_p0 }
  0xba   : > { %p3746_p8 = pnand %p3745_p5, %p3739_p1 }
  0xbc   : > { %3749 = shalt.err (!%p3746_p8)
}
  0xbd   : > { %3448 = dma.hbm_to_vmem [thread:$0]  (!%p4089_p9), %s4832_s9, 32, %s4194_s20, [#allocation11], %s4831_s13, %s4831_s13, %s4830_s14  }
  0xbe   : > { %s3933_s19 = smov [#allocation15]   ;;  %s3934_s30 = smov [#allocation18]  }
  0xbf   : > { %s527_s26 = sshll.u32 %s3933_s19, 4  ;;  %s562_s1 = sshll.u32 %s3934_s30, 4  ;;  %s528_s26 = int_to_ptr.vmem [resolvable:$true] %s527_s26  ;;  %s4243_s1 = int_to_ptr.vmem [resolvable:$true] %s562_s1 }
  0xc0   : > { %s3750_s21 = scalar_lea.hbm %s4783_s12, 32 }
  0xc1   : > { %p3751_p10 = scmp.ne.s32.totalorder %s4783_s12, %s3750_s21  ;;  %p3757_p4 = scmp.lt.u32.totalorder %s3750_s21, %s4783_s12 }
  0xc3   : > { %p3753_p12 = pnand %p3751_p10, %p4105_p11 }
  0xc5   : > { %p3754_p7 = pneg %p3753_p12 }
  0xc7   : > { %p3759_p6 = pnand %p3757_p4, %p3754_p7 }
  0xc9   : > { %3762 = shalt.err (!%p3759_p6)
}
  0xca   : > { %s3763_s22 = scalar_lea.vmem %s528_s26, 32  ;;  %p3771_p2 = scmp.lt.s32.totalorder %s528_s26, %s528_s26 }
  0xcb   : > { %p3764_p13 = scmp.ne.s32.totalorder %s528_s26, %s3763_s22  ;;  %p3772_p3 = scmp.lt.s32.totalorder %s3763_s22, %s3763_s22 }
  0xcd   : > { %p3766_p0 = pnand %p3764_p13, %p4105_p11  ;;  %p3773_p5 = por %p3772_p3, %p3771_p2 }
  0xcf   : > { %p3767_p1 = pneg %p3766_p0 }
  0xd1   : > { %p3774_p8 = pnand %p3773_p5, %p3767_p1 }
  0xd3   : > { %3777 = shalt.err (!%p3774_p8)
}
  0xd4   : > { %3454 = dma.hbm_to_vmem [thread:$0]  (!%p4089_p9), %s4783_s12, 32, %s528_s26, [#allocation14], %s4831_s13, %s4831_s13, %s4830_s14  }
  0xd5   : > { %s3778_s15 = scalar_lea.hbm %s4788_s17, 512 }
  0xd6   : > { %p3779_p10 = scmp.ne.s32.totalorder %s4788_s17, %s3778_s15  ;;  %p3785_p4 = scmp.lt.u32.totalorder %s3778_s15, %s4788_s17 }
  0xd8   : > { %p3781_p12 = pnand %p3779_p10, %p4105_p11 }
  0xda   : > { %p3782_p7 = pneg %p3781_p12 }
  0xdc   : > { %p3787_p6 = pnand %p3785_p4, %p3782_p7 }
  0xde   : > { %3790 = shalt.err (!%p3787_p6)
}
  0xdf   : > { %s3791_s14 = scalar_lea.vmem %s4243_s1, 512  ;;  %p3799_p2 = scmp.lt.s32.totalorder %s4243_s1, %s4243_s1 }
  0xe0   : > { %p3792_p13 = scmp.ne.s32.totalorder %s4243_s1, %s3791_s14  ;;  %p3800_p3 = scmp.lt.s32.totalorder %s3791_s14, %s3791_s14 }
  0xe2   : > { %p3794_p0 = pnand %p3792_p13, %p4105_p11  ;;  %p3801_p5 = por %p3800_p3, %p3799_p2 }
  0xe4   : > { %p3795_p1 = pneg %p3794_p0 }
  0xe6   : > { %p3802_p8 = pnand %p3801_p5, %p3795_p1 }
  0xe8   : > { %3805 = shalt.err (!%p3802_p8)
}
  0xe9   : > { %s4833_s13 = smov 8   ;;  %s4834_s26 = smov 128  }
  0xea   : > { %3460 = dma.hbm_to_vmem [thread:$0]  (!%p4089_p9), %s4788_s17, 512, %s4243_s1, [#allocation17], %s4834_s26, %s4834_s26, %s4833_s13  }
  0xeb   : > { %s2934_s0 = sadd.s32 4294967294, %s3920_s24   ;;  %s4294_s29 = sadd.s32 1, %s3920_s24  }
  0xec   : > { %s72_s19 = ssub.s32 %s3920_s24, %s4294_s29  ;;  %s75_s30 = sadd.s32 1, %s3916_s23 }
  0xed   : > { %p73_p11 = scmp.eq.s32.totalorder %s72_s19, 0  ;;  %p82_p10 = scmp.ne.s32.totalorder %s3916_s23, %s3912_s10 }
  0xee   : > { %p83_p12 = scmp.eq.s32.totalorder %s3920_s24, 0  ;;  %p88_p7 = scmp.ne.s32.totalorder %s3912_s10, %s3908_s2 }
  0xef   : > { %s4305_s7 = scalar_select %p73_p11, %s3916_s23, %s75_s30  }
  0xf0   : > { %p4307_p4 = por %p83_p12, %p82_p10  ;;  %p4836_p6 = scmp.eq.s32.totalorder %s4075_s27, 0 }
  0xf1   : > { %p427_p13 = scmp.eq.s32.totalorder %s4075_s27, 1  ;;  %p433_p0 = scmp.eq.s32.totalorder %s2934_s0, 1 }
  0xf2   : > { %p4313_p9 = por %p4836_p6, %p88_p7  ;;  %p3477_p1 = scmp.lt.s32.totalorder %s3920_s24, 2 }
  0xf3   : > { %s583_s21 = sand.u32 1, %s3916_s23   ;;  %p4320_p2 = por %p427_p13, %p82_p10 }
  0xf4   : > { %p4324_p3 = por %p433_p0, %p88_p7  ;;  %s2945_s20 = sshll.u32 %s583_s21, 3 }
  0xf5   : > { %s4838_s25 = scalar_select %p4320_p2, 1, 0 }
  0xf6   : > { %s4839_s3 = scalar_select %p4324_p3, 1, 0 }
  0xf7   : > { %s2946_s14 = sshll.u32 %s3920_s24, 7  ;;  %s4840_s22 = sld [smem:[#allocation29_spill]] }
  0xf8   : > { %s587_s0 = scalar_lea.vmem [#allocation4], %s2945_s20  ;;  %p4338_p5 = pnand %p3477_p1, %p4307_p4 }
  0xf9   : > { %s594_s19 = sshll.u32 %s587_s0, 4  ;;  %s584_s6 = scalar_lea.sflag [#allocation5], %s583_s21  ;;  %s4334_s19 = int_to_ptr.vmem [resolvable:$true] %s594_s19 }
  0xfa   : > { %p3808_p11 = pneg %p4338_p5 }
  0xfd   : > { %s4332_s18 = scalar_lea.hbm %s4840_s22, %s2946_s14  ;;  %s3811_s13 = scalar_lea.hbm %s4840_s22, 256 }
  0xfe   : > { %s3806_s9 = scalar_lea.hbm %s4332_s18, 128  ;;  %p3812_p7 = scmp.lt.u32.totalorder %s4332_s18, %s4840_s22 }
  0xff   : > { %p3807_p8 = scmp.ne.s32.totalorder %s4332_s18, %s3806_s9  ;;  %p3813_p4 = scmp.lt.u32.totalorder %s3811_s13, %s3806_s9 }
 0x100   : > { %p3815_p13 = scmp.lt.u32.totalorder %s3806_s9, %s4332_s18 }
 0x101   : > { %p3809_p10 = pnand %p3808_p11, %p3807_p8  ;;  %p3814_p6 = por %p3813_p4, %p3812_p7 }
 0x103   : > { %p3810_p12 = pneg %p3809_p10  ;;  %p3816_p0 = por %p3815_p13, %p3814_p6 }
 0x105   : > { %p3817_p1 = pnand %p3816_p0, %p3810_p12 }
 0x107   : > { %3820 = shalt.err (!%p3817_p1)
}
 0x108   : > { %s3821_s21 = scalar_lea.vmem %s4334_s19, 128  ;;  %s3935_s0 = smov [#allocation4]  }
 0x109   : > { %p3822_p8 = scmp.ne.s32.totalorder %s4334_s19, %s3821_s21  ;;  %s3826_s20 = sshll.u32 %s3935_s0, 4  ;;  %s3827_s20 = int_to_ptr.vmem [resolvable:$false] %s3826_s20 }
 0x10a   : > { %s3828_s14 = scalar_lea.vmem %s3827_s20, 256  ;;  %p3829_p2 = scmp.lt.s32.totalorder %s4334_s19, %s3827_s20 }
 0x10b   : > { %p3824_p10 = pnand %p3822_p8, %p3808_p11  ;;  %p3830_p7 = scmp.lt.s32.totalorder %s3828_s14, %s3821_s21 }
 0x10d   : > { %p3825_p3 = pneg %p3824_p10  ;;  %p3831_p4 = por %p3830_p7, %p3829_p2 }
 0x10f   : > { %p3832_p6 = pnand %p3831_p4, %p3825_p3 }
 0x111   : > { %3835 = shalt.err (!%p3832_p6)
}
 0x112   : > { %3464 = dma.hbm_to_vmem [thread:$0]  (!%p4338_p5), %s4332_s18, 128, %s4334_s19, %s584_s6  }
 0x113   : > { %p4842_p12 = scmp.ne.s32.totalorder %s4824_s28, 0 }
 0x114   : > { %s4370_s9 = sand.u32 (!%p4842_p12), 1, %s3912_s10  }
 0x115   : > { %603 = sbr.rel (%p4842_p12) target bundleno = 6261 (0x1875), region = 88  ;;  %s4806_s13 = sshll.u32 (!%p4842_p12), %s4370_s9, 3 }
 0x116   : > { %s606_s15 = scalar_lea.sflag (!%p4842_p12), [#allocation5], %s4370_s9  ;;  %s4376_s26 = scalar_lea.vmem (!%p4842_p12), [#allocation4], %s4806_s13 }
 0x11c   : > { %3883 = dma.done.wait (%p4313_p9), %s606_s15, 128  }
 0x11d   : > { %3885 = vsyncadd (%p4313_p9), %s606_s15, 4294967168  ;;  %p4843_p2 = scmp.eq.s32.totalorder %s4075_s27, 0 }
 0x11f   : > { %3887 = dma.done.wait (%p4843_p2), [#allocation8], 64   ;;  %p4844_p3 = pmov %p4843_p2 }
 0x120   : > { %p4845_p5 = pmov %p4843_p2 }
 0x121   : > { %3889 = vsyncadd (%p4844_p3), [#allocation8], 4294967232 }
 0x122   : > { %3891 = dma.done.wait (%p4845_p5), [#allocation11], 64   ;;  %p4846_p11 = pmov %p4843_p2 }
 0x123   : > { %p4847_p13 = pmov %p4843_p2 }
 0x124   : > { %3893 = vsyncadd (%p4846_p11), [#allocation11], 4294967232 }
 0x125   : > { %3895 = dma.done.wait (%p4847_p13), [#allocation14], 64   ;;  %p4848_p0 = pmov %p4843_p2 }
 0x127   : > { %3897 = vsyncadd (%p4848_p0), [#allocation14], 4294967232  ;;  %p4849_p9 = pmov %p4848_p0 }
 0x128   : > { %p4850_p1 = pmov %p4848_p0 }
 0x129   : > { %3899 = dma.done.wait (%p4849_p9), [#allocation17], 1024  }
 0x12a   : > { %3901 = vsyncadd (%p4850_p1), [#allocation17], 4294966272  ;;  %p696_p8 = scmp.lt.s32.totalorder %s4075_s27, 1  ;;  %v3936_v0 = vmov 0   ;;  %s4851_s19 = sld [smem:[#allocation28_spill]]  ;;  %v3937_v4 = vmov 0.0|0.0   ;;  %v707_v11 = vlaneseq }
 0x12b   : > { %3542 = vset.pattern.permute.xlu0 %v3936_v0  ;;  %s4852_s4 = sld [smem:[#allocation31_spill]]  ;;  %3312 = vmatprep.subr.bf16.mxu0 %v3937_v4  ;;  %v3938_v6 = vmov 1   ;;  %vm3939_vm0 = vmmov 0   ;;  %v3940_v10 = vmov 0.0   ;;  %v701_v15 = vld [vmem:[#allocation7] sm:$0x3] }
 0x12c   : > { %s697_s6 = scalar_select %p696_p8, %s4075_s27, 1  ;;  %3121 = vmatprep.mubr.msk.f32.mxu0 %vm3939_vm0, %v3940_v10  ;;  %3124 = vmatprep.subr.mxu1 %v3940_v10  ;;  %v4424_v12 = vshrl.u32 %v707_v11, 7  ;;  %v722_v22 = vld [vmem:[%s4376_s26] sm:$0xff]  ;;  %vm728_vm1 = vcmask 261120   ;;  %vm805_vm2 = vcmask 130048   ;;  %vm881_vm3 = vcmask 64512  }
 0x12d   : > { %3126 = vmatprep.mubr.msk.f32.mxu1 %vm3939_vm0, %v3940_v10  ;;  %s3941_s18 = smov 96   ;;  %s4807_s26 = smov 64   ;;  %v969_v53 = vld [vmem:[%s4776_s5] sm:$0xff]  ;;  %v970_v54 = vld [vmem:[%s4776_s5 + $0x8] sm:$0xff]  ;;  %v1137_v59 = vld [vmem:[%s4776_s5 + $0x10] sm:$0xff]  ;;  %vm1416_vm4 = vcmask 523264  }
 0x12e   : > { %s2958_s28 = sshll.u32 %s697_s6, 3  ;;  %v709_v13 = vsub.s32 0, %v4424_v12  ;;  %v718_v14 = vsub.s32 1, %v4424_v12  ;;  %s4808_s21 = smov 48   ;;  %v3322_v57 = vpack.c.bf16 %v970_v54, %v969_v53  ;;  %v1138_v60 = vld [vmem:[%s4776_s5 + $0x18] sm:$0xff] }
 0x12f   : > { %v3319_v61 = vpack.c.bf16 %v1138_v60, %v1137_v59  ;;  %s4853_s15 = sld [smem:[#allocation35_spill]]  ;;  %s4854_s0 = sld [smem:[#allocation36_spill]] }
 0x130   : > { %s699_s30 = scalar_lea.vmem %s4851_s19, %s2958_s28  ;;  %v710_v17 = vrot.slane %v701_v15, %v709_v13  ;;  %v719_v18 = vrot.slane %v701_v15, %v718_v14  ;;  %s3942_s19 = smov 80  }
 0x131   : > { %v700_v1 = vld [vmem:[%s699_s30] sm:$0xff]  ;;  %v725_v3 = vld [vmem:[%s4852_s4 + $0x8] sm:$0xff]  ;;  %v726_v7 = vld [vmem:[%s4852_s4 + $0x10] sm:$0xff]  ;;  %s3943_s30 = smov 112   ;;  %s4857_s20 = sld [smem:[#allocation37_spill]] }
 0x132   : > { %704 = vperm.xlu0 %3542, %v700_v1   ;;  %v724_v2 = vld [vmem:[%s4852_s4] sm:$0xff]  ;;  %v727_v8 = vld [vmem:[%s4852_s4 + $0x18] sm:$0xff]  ;;  %s4858_s14 = sld [smem:[#allocation38_spill]]  ;;  %s4859_s6 = sshll.u32 %s4370_s9, 3 }
 0x133   : > { %v3313_v5 = vpack.c.bf16 %v725_v3, %v724_v2  ;;  %v3316_v9 = vpack.c.bf16 %v727_v8, %v726_v7  ;;  %s695_s28 = scalar_lea.vmem [#allocation19], %s4859_s6  ;;  %p4861_p7 = scmp.ne.s32.totalorder %s4838_s25, 0 }
 0x134   : > { %s2776_s1 = sshll.u32 %s695_s28, 4  ;;  %s3946_s6 = smov [#allocation19]   ;;  %s4728_s1 = int_to_ptr.vmem [resolvable:$true] %s2776_s1 }
 0x135   : > { %3314 = vmatpush3.bf16.msra.mxu0 %v3313_v5 }
 0x136   : > { %3543 = vset.pattern.permute.xlu0 %v3938_v6  ;;  %3315 = vmatprep.subr.bf16.mxu0 %v3937_v4 }
 0x137   : > { %713 = vperm.xlu0 %3543, %v700_v1  }
 0x139   : > { %3317 = vmatpush3.bf16.msra.mxu0 %v3316_v9 }
 0x13a   : > { %3134 = vmatprep.subr.mxu0 %v3940_v10 }
 0x1b1   : > { %v705_v16 = vpop.permute.xlu0 %704 }
 0x1b2   : > { %v711_v20 = vmul.f32 %v710_v17, %v705_v16 }
 0x1b6   : > { %v714_v19 = vpop.permute.xlu0 %713 }
 0x1b7   : > { %v720_v21 = vmul.f32 %v719_v18, %v714_v19  ;;  %v1316_v19 = vld [vmem:[%s4779_s8] sm:$0xff] }
 0x1b9   : > { %v721_v23 = vadd.f32 %v720_v21, %v711_v20  ;;  %v1317_v20 = vld [vmem:[%s4779_s8 + $0x8] sm:$0xff] }
 0x1ba   : > { %v3325_v21 = vpack.c.bf16 %v1317_v20, %v1316_v19 }
 0x1bb   : > { %v4431_v24 = vadd.f32 %v722_v22, %v721_v23  ;;  %v1318_v22 = vld [vmem:[%s4779_s8 + $0x10] sm:$0xff]  ;;  %v1319_v23 = vld [vmem:[%s4779_s8 + $0x18] sm:$0xff] }
 0x1bd   : > { %3122 = vmatmul.mubr.msk.f32.vlgmr.msra.gmra.mrb[0].mxu0 %vm728_vm1, %v4431_v24 }
 0x1be   : > { %3136 = vmatprep.mubr.msk.f32.mxu0 %vm3939_vm0, %v3940_v10 }
 0x290   : > { %v798_v25 = vpop.f32.mrb[0].mxu0 }
 0x291   : > { %803 = vrot.lane.b32.xlu1 %v798_v25, %s3941_s18  ;;  %v3123_v26 = vpop.f32.mrb[1].mxu0 }
 0x292   : > { %v1402_v26 = vld [vmem:[%s4853_s15 + $0x8] sm:$0xff] }
 0x295   : > { %973 = vrot.lane.b32.xlu1 %v798_v25, %s3942_s19 }
 0x299   : > { %971 = vrot.lane.b32.xlu1 %v798_v25, %s3943_s30 }
 0x303   : > { %v804_v27 = vpop.permute.xlu1 %803 }
 0x304   : > { %3125 = vmatpush3.xpose.msk.msra.mxu1 %vm805_vm2, %v804_v27  ;;  %v1403_v27 = vld [vmem:[%s4853_s15 + $0x10] sm:$0xff] }
 0x305   : > { %3129 = vmatprep.subr.mxu1 %v3940_v10 }
 0x307   : > { %3127 = vmatmul.mubr.msk.f32.vlgmr.msra.gmra.mrb[0].mxu1 %vm805_vm2, %v798_v25  ;;  %v974_v28 = vpop.permute.xlu1 %973 }
 0x308   : > { %3135 = vmatpush3.xpose.msk.msra.mxu0 %vm805_vm2, %v974_v28  ;;  %3131 = vmatprep.mubr.msk.f32.mxu1 %vm3939_vm0, %v3940_v10 }
 0x309   : > { %3318 = vmatprep.subr.bf16.mxu0 %v3937_v4 }
 0x30b   : > { %v972_v29 = vpop.permute.xlu1 %971 }
 0x30c   : > { %3137 = vmatmul.mubr.msk.f32.vlgmr.msra.gmra.mrb[2].mxu0 %vm805_vm2, %v972_v29  ;;  %v1404_v29 = vld [vmem:[%s4853_s15 + $0x18] sm:$0xff] }
 0x30d   : > { %3148 = vmatprep.mubr.msk.f32.mxu0 %vm3939_vm0, %v3940_v10  ;;  %3320 = vmatpush3.bf16.msra.mxu0 %v3319_v61 }
 0x30e   : > { %3324 = vmatprep.subr.bf16.mxu0 %v3937_v4 }
 0x3da   : > { %v876_v30 = vpop.f32.mrb[0].mxu1 }
 0x3db   : > { %v880_v31 = vmul.f32 0.25, %v876_v30  ;;  %v3128_v32 = vpop.f32.mrb[1].mxu1  ;;  %v3334_v30 = vpack.c.bf16 %v1404_v29, %v1403_v27 }
 0x3dc   : > { %v1406_v32 = vld [vmem:[%s4853_s15 + $0x28] sm:$0xff] }
 0x3dd   : > { %v882_v33 = vsel %vm881_vm3, %v880_v31, -inf }
 0x3de   : > { %883 = vmax.xlane.f32.xlu0 %v882_v33 }
 0x3df   : > { %v1045_v34 = vpop.f32.mrb[2].mxu0 }
 0x3e0   : > { %v1049_v35 = vmul.f32 0.25, %v1045_v34  ;;  %v3138_v36 = vpop.f32.mrb[3].mxu0 }
 0x3e2   : > { %v1050_v37 = vsel %vm881_vm3, %v1049_v35, -inf }
 0x3e3   : > { %1051 = vmax.xlane.f32.xlu1 %v1050_v37 }
 0x3f4   : > { %893 = vrot.lane.b32.xlu1 %v798_v25, %s4807_s26 }
 0x46b   : > { %v884_v38 = vpop.xlane.xlu0 %883 }
 0x46c   : > { %v885_v39 = vsub.f32 %v880_v31, %v884_v38  ;;  %v1405_v31 = vld [vmem:[%s4853_s15 + $0x20] sm:$0xff]  ;;  %v2968_v38 = vld [vmem:[#allocation9] ss:$0 sm:$0xff] }
 0x46d   : > { %v3337_v33 = vpack.c.bf16 %v1406_v32, %v1405_v31 }
 0x46e   : > { %v886_v40 = vmul.f32 1.442695, %v885_v39 }
 0x470   : > { %3544 = vpow2.f32 %v886_v40  ;;  %v1052_v41 = vpop.xlane.xlu1 %1051  ;;  %v2969_v40 = vld [vmem:[#allocation10] ss:$0 sm:$0xff] }
 0x471   : > { %v1053_v42 = vsub.f32 %v1049_v35, %v1052_v41 }
 0x473   : > { %v1054_v43 = vmul.f32 1.442695, %v1053_v42 }
 0x474   : > { %v894_v44 = vpop.permute.xlu1 %893 }
 0x475   : > { %3546 = vpow2.f32 %v1054_v43  ;;  %3130 = vmatpush3.msra.mxu1 %v894_v44  ;;  %v1407_v43 = vld [vmem:[%s4853_s15 + $0x30] sm:$0xff]  ;;  %v1408_v44 = vld [vmem:[%s4853_s15 + $0x38] sm:$0xff] }
 0x476   : > { %3139 = vmatprep.subr.mxu1 %v3940_v10 }
 0x47a   : > { %v3545_v45 = vpop.eup %3544 }
 0x47b   : > { %v888_v46 = vsel %vm881_vm3, %v3545_v45, 0.0 }
 0x47c   : > { %889 = vadd.xlane.f32.xlu0 %v888_v46  ;;  %v2970_v46 = vld [vmem:[#allocation12] ss:$0 sm:$0xff] }
 0x47f   : > { %v3547_v47 = vpop.eup %3546 }
 0x480   : > { %v1056_v48 = vsel %vm881_vm3, %v3547_v47, 0.0 }
 0x481   : > { %1057 = vadd.xlane.f32.xlu0 %v1056_v48 }
 0x497   : > { %1061 = vrot.lane.b32.xlu0 %v798_v25, %s4808_s21  ;;  %v1401_v25 = vld [vmem:[%s4853_s15] sm:$0xff] }
 0x498   : > { %v3331_v28 = vpack.c.bf16 %v1402_v26, %v1401_v25 }
 0x509   : > { %v890_v49 = vpop.xlane.xlu0 %889 }
 0x50a   : > { %3548 = vrcp.f32 %v890_v49 }
 0x50e   : > { %v1058_v50 = vpop.xlane.xlu0 %1057 }
 0x50f   : > { %3550 = vrcp.f32 %v1058_v50 }
 0x512   : > { %v1062_v55 = vpop.permute.xlu0 %1061 }
 0x514   : > { %v3549_v51 = vpop.eup %3548 }
 0x515   : > { %v892_v52 = vmul.f32 %v3549_v51, %v3545_v45  ;;  %v3340_v45 = vpack.c.bf16 %v1408_v44, %v1407_v43  ;;  %v2972_v51 = vld [vmem:[#allocation13] ss:$0 sm:$0xff] }
 0x517   : > { %3132 = vmatmul.mubr.msk.f32.vlgmr.msra.gmra.mrb[2].mxu1 %vm881_vm3, %v892_v52 }
 0x518   : > { %3140 = vmatpush3.msra.mxu1 %v1062_v55  ;;  %3141 = vmatprep.mubr.msk.f32.mxu1 %vm3939_vm0, %v3940_v10 }
 0x519   : > { %v3551_v56 = vpop.eup %3550  ;;  %3321 = vmatprep.subr.bf16.mxu1 %v3937_v4 }
 0x51a   : > { %v1060_v58 = vmul.f32 %v3551_v56, %v3547_v47 }
 0x51c   : > { %3142 = vmatmul.mubr.msk.f32.vlgmr.msra.gmra.mrb[4].mxu1 %vm881_vm3, %v1060_v58 }
 0x51d   : > { %3323 = vmatpush3.bf16.msra.mxu1 %v3322_v57  ;;  %3155 = vmatprep.mubr.msk.f32.mxu1 %vm3939_vm0, %v3940_v10 }
 0x51e   : > { %3330 = vmatprep.subr.bf16.mxu1 %v3937_v4 }
 0x5ea   : > { %v965_v62 = vpop.f32.mrb[2].mxu1 }
 0x5eb   : > { %v3133_v63 = vpop.f32.mrb[3].mxu1  ;;  %3156 = vmatmul.mubr.msk.f32.vlgmr.msra.gmra.mrb[6].mxu1 %vm805_vm2, %v965_v62  ;;  %v2976_v62 = vld [vmem:[%s4852_s4 + $0x20] sm:$0xff] }
 0x5ec   : > { %3185 = vmatprep.mubr.msk.f32.mxu1 %vm3939_vm0, %v3940_v10  ;;  %3332 = vmatpush3.bf16.msra.mxu1 %v3331_v28  ;;  %v2977_v63 = vld [vmem:[%s4852_s4 + $0x28] sm:$0xff] }
 0x5ed   : > { %3333 = vmatprep.subr.bf16.mxu1 %v3937_v4 }
 0x5ef   : > { %v1133_v0 = vpop.f32.mrb[4].mxu1 }
 0x5f0   : > { %v3143_v1 = vpop.f32.mrb[5].mxu1  ;;  %3149 = vmatmul.mubr.msk.f32.vlgmr.msra.gmra.mrb[4].mxu0 %vm805_vm2, %v1133_v0  ;;  %3335 = vmatpush3.bf16.msra.mxu1 %v3334_v30  ;;  %v3343_v0 = vpack.c.bf16 %v2977_v63, %v2976_v62 }
 0x5f1   : > { %3166 = vmatprep.mubr.msk.f32.mxu0 %vm3939_vm0, %v3940_v10  ;;  %3326 = vmatpush3.bf16.msra.mxu0 %v3325_v21  ;;  %v2978_v1 = vld [vmem:[%s4852_s4 + $0x30] sm:$0xff] }
 0x5f2   : > { %3327 = vmatprep.subr.bf16.mxu0 %v3937_v4  ;;  %3336 = vmatprep.subr.bf16.mxu1 %v3937_v4 }
 0x5f4   : > { %3338 = vmatpush3.bf16.msra.mxu1 %v3337_v33 }
 0x5f5   : > { %3339 = vmatprep.subr.bf16.mxu1 %v3937_v4 }
 0x5f8   : > { %3341 = vmatpush3.bf16.msra.mxu1 %v3340_v45 }
 0x5f9   : > { %3204 = vmatprep.subr.mxu1 %v3940_v10 }
 0x6be   : > { %v1281_v2 = vpop.f32.mrb[6].mxu1 }
 0x6bf   : > { %v3157_v3 = vpop.f32.mrb[7].mxu1 }
 0x6c3   : > { %v1208_v5 = vpop.f32.mrb[4].mxu0 }
 0x6c4   : > { %v1282_v6 = vadd.f32 %v1281_v2, %v1208_v5  ;;  %v3150_v7 = vpop.f32.mrb[5].mxu0  ;;  %v2979_v2 = vld [vmem:[%s4852_s4 + $0x38] sm:$0xff] }
 0x6c5   : > { %v3346_v3 = vpack.c.bf16 %v2979_v2, %v2978_v1 }
 0x6c6   : > { %v1285_v8 = vadd.f32 %v1282_v6, %v4431_v24  ;;  %v3328_v24 = vpack.c.bf16 %v1319_v23, %v1318_v22 }
 0x6c8   : > { %v1288_v9 = vsel %vm728_vm1, %v1285_v8, 0.0  ;;  %3329 = vmatpush3.bf16.msra.mxu0 %v3328_v24 }
 0x6c9   : > { %1289 = vadd.xlane.f32.xlu1 %v1288_v9  ;;  %3342 = vmatprep.subr.bf16.mxu0 %v3937_v4  ;;  %v2974_v9 = vld [vmem:[#allocation15] ss:$0 sm:$0xff] }
 0x756   : > { %v1290_v14 = vpop.xlane.xlu1 %1289 }
 0x757   : > { %v1292_v15 = vmul.f32 0.03125, %v1290_v14 }
 0x759   : > { %v1293_v16 = vsub.f32 %v1285_v8, %v1292_v15  ;;  %v2975_v15 = vld [vmem:[%s4854_s0] ss:$0 sm:$0xff] }
 0x75b   : > { %v1294_v17 = vmul.f32 %v1293_v16, %v1293_v16 }
 0x75d   : > { %v1295_v18 = vsel %vm728_vm1, %v1294_v17, 0.0 }
 0x75e   : > { %1296 = vadd.xlane.f32.xlu0 %v1295_v18 }
 0x7eb   : > { %v1297_v34 = vpop.xlane.xlu0 %1296 }
 0x7ec   : > { %v1298_v35 = vmul.f32 0.03125, %v1297_v34 }
 0x7ee   : > { %v1299_v36 = vadd.f32 1e-05, %v1298_v35 }
 0x7f0   : > { %3552 = vrsqrt.f32 %v1299_v36 }
 0x7fa   : > { %v3553_v37 = vpop.eup %3552 }
 0x7fb   : > { %v1301_v39 = vmul.f32 %v3553_v37, %v1293_v16 }
 0x7fd   : > { %v1308_v41 = vmul.f32 %v2968_v38, %v1301_v39 }
 0x7ff   : > { %v1315_v42 = vadd.f32 %v2969_v40, %v1308_v41 }
 0x801   : > { %3167 = vmatmul.mubr.msk.f32.vlgmr.msra.gmra.mrb[6].mxu0 %vm728_vm1, %v1315_v42 }
 0x802   : > { %3196 = vmatprep.mubr.msk.f32.mxu0 %vm3939_vm0, %v3940_v10  ;;  %3344 = vmatpush3.bf16.msra.mxu0 %v3343_v0 }
 0x803   : > { %3345 = vmatprep.subr.bf16.mxu0 %v3937_v4 }
 0x806   : > { %3347 = vmatpush3.bf16.msra.mxu0 %v3346_v3 }
 0x807   : > { %3199 = vmatprep.subr.mxu0 %v3940_v10 }
 0x8d4   : > { %v1396_v47 = vpop.f32.mrb[6].mxu0 }
 0x8d5   : > { %v1397_v48 = vadd.f32 %v2970_v46, %v1396_v47  ;;  %v3168_v49 = vpop.f32.mrb[7].mxu0  ;;  %v2984_v46 = vld [vmem:[%s4776_s5 + $0x20] sm:$0xff]  ;;  %v2985_v47 = vld [vmem:[%s4776_s5 + $0x28] sm:$0xff] }
 0x8d7   : > { %v1400_v50 = vmax.f32 %v1397_v48, 0.0 }
 0x8d9   : > { %3186 = vmatmul.mubr.msk.f32.vlgmr.msra.gmra.mrb[8].mxu1 %vm1416_vm4, %v1400_v50  ;;  %v3352_v50 = vpack.c.bf16 %v2985_v47, %v2984_v46 }
 0x8da   : > { %3206 = vmatprep.mubr.msk.f32.mxu1 %vm3939_vm0, %v3940_v10 }
 0x9ac   : > { %v1486_v52 = vpop.f32.mrb[8].mxu1 }
 0x9ad   : > { %v1487_v53 = vadd.f32 %v2972_v51, %v1486_v52  ;;  %v3187_v54 = vpop.f32.mrb[9].mxu1  ;;  %v2989_v52 = vld [vmem:[%s4776_s5 + $0x30] sm:$0xff] }
 0x9af   : > { %v1490_v55 = vadd.f32 %v1487_v53, %v1315_v42  ;;  %v2990_v53 = vld [vmem:[%s4776_s5 + $0x38] sm:$0xff] }
 0x9b0   : > { %v3349_v54 = vpack.c.bf16 %v2990_v53, %v2989_v52 }
 0x9b1   : > { %v1493_v56 = vsel %vm728_vm1, %v1490_v55, 0.0 }
 0x9b2   : > { %1494 = vadd.xlane.f32.xlu1 %v1493_v56 }
 0xa3f   : > { %v1495_v57 = vpop.xlane.xlu1 %1494 }
 0xa40   : > { %v1496_v58 = vmul.f32 0.03125, %v1495_v57 }
 0xa42   : > { %v1497_v59 = vsub.f32 %v1490_v55, %v1496_v58 }
 0xa44   : > { %v1498_v60 = vmul.f32 %v1497_v59, %v1497_v59 }
 0xa46   : > { %v1499_v61 = vsel %vm728_vm1, %v1498_v60, 0.0 }
 0xa47   : > { %1500 = vadd.xlane.f32.xlu0 %v1499_v61 }
 0xad4   : > { %v1501_v5 = vpop.xlane.xlu0 %1500 }
 0xad5   : > { %v1502_v6 = vmul.f32 0.03125, %v1501_v5 }
 0xad7   : > { %v1503_v7 = vadd.f32 1e-05, %v1502_v6 }
 0xad9   : > { %3554 = vrsqrt.f32 %v1503_v7 }
 0xae3   : > { %v3555_v8 = vpop.eup %3554 }
 0xae4   : > { %v1505_v14 = vmul.f32 %v3555_v8, %v1497_v59  ;;  %v2995_v8 = vld [vmem:[%s4779_s8 + $0x20] sm:$0xff] }
 0xae6   : > { %v1512_v16 = vmul.f32 %v2974_v9, %v1505_v14  ;;  %v2996_v9 = vld [vmem:[%s4779_s8 + $0x28] sm:$0xff] }
 0xae7   : > { %v3355_v14 = vpack.c.bf16 %v2996_v9, %v2995_v8 }
 0xae8   : > { %v4554_v17 = vadd.f32 %v2975_v15, %v1512_v16  ;;  %v2997_v15 = vld [vmem:[%s4779_s8 + $0x30] sm:$0xff]  ;;  %v2998_v16 = vld [vmem:[%s4779_s8 + $0x38] sm:$0xff] }
 0xaea   : > { %3197 = vmatmul.mubr.msk.f32.vlgmr.msra.gmra.mrb[8].mxu0 %vm728_vm1, %v4554_v17 }
 0xaeb   : > { %3201 = vmatprep.mubr.msk.f32.mxu0 %vm3939_vm0, %v3940_v10 }
 0xbbd   : > { %v1594_v18 = vpop.f32.mrb[8].mxu0 }
 0xbbe   : > { %1768 = vrot.lane.b32.xlu0 %v1594_v18, %s3942_s19  ;;  %1599 = vrot.lane.b32.xlu1 %v1594_v18, %s3941_s18  ;;  %v3198_v19 = vpop.f32.mrb[9].mxu0  ;;  %s4855_s18 = smov 48   ;;  %s4856_s19 = smov 64  }
 0xbbf   : > { %v3002_v19 = vld [vmem:[%s4853_s15 + $0x48] sm:$0xff] }
 0xbc2   : > { %1766 = vrot.lane.b32.xlu1 %v1594_v18, %s3943_s30 }
 0xc30   : > { %v1600_v20 = vpop.permute.xlu1 %1599  ;;  %v1769_v21 = vpop.permute.xlu0 %1768 }
 0xc31   : > { %3200 = vmatpush3.xpose.msk.msra.mxu0 %vm805_vm2, %v1600_v20  ;;  %v3003_v20 = vld [vmem:[%s4853_s15 + $0x50] sm:$0xff] }
 0xc32   : > { %3209 = vmatprep.subr.mxu0 %v3940_v10 }
 0xc34   : > { %3202 = vmatmul.mubr.msk.f32.vlgmr.msra.gmra.mrb[10].mxu0 %vm805_vm2, %v1594_v18  ;;  %v1767_v22 = vpop.permute.xlu1 %1766 }
 0xc35   : > { %3210 = vmatpush3.xpose.msk.msra.mxu0 %vm805_vm2, %v1769_v21  ;;  %3211 = vmatprep.mubr.msk.f32.mxu0 %vm3939_vm0, %v3940_v10 }
 0xc36   : > { %3348 = vmatprep.subr.bf16.mxu0 %v3937_v4 }
 0xc38   : > { %3212 = vmatmul.mubr.msk.f32.vlgmr.msra.gmra.mrb[12].mxu0 %vm805_vm2, %v1767_v22  ;;  %v3004_v22 = vld [vmem:[%s4853_s15 + $0x58] sm:$0xff] }
 0xc39   : > { %3223 = vmatprep.mubr.msk.f32.mxu0 %vm3939_vm0, %v3940_v10  ;;  %3350 = vmatpush3.bf16.msra.mxu0 %v3349_v54 }
 0xc3a   : > { %3354 = vmatprep.subr.bf16.mxu0 %v3937_v4 }
 0xd07   : > { %v1671_v23 = vpop.f32.mrb[10].mxu0 }
 0xd08   : > { %v1675_v24 = vmul.f32 0.25, %v1671_v23  ;;  %v3203_v25 = vpop.f32.mrb[11].mxu0  ;;  %v3364_v23 = vpack.c.bf16 %v3004_v22, %v3003_v20  ;;  %v2408_v22 = vld [vmem:[%s4858_s14 + $0x18] sm:$0xff] }
 0xd09   : > { %v3006_v25 = vld [vmem:[%s4853_s15 + $0x68] sm:$0xff] }
 0xd0a   : > { %v1676_v26 = vsel %vm881_vm3, %v1675_v24, -inf }
 0xd0b   : > { %1677 = vmax.xlane.f32.xlu1 %v1676_v26  ;;  %v1840_v27 = vpop.f32.mrb[12].mxu0 }
 0xd0c   : > { %v1844_v28 = vmul.f32 0.25, %v1840_v27  ;;  %v3213_v29 = vpop.f32.mrb[13].mxu0 }
 0xd0e   : > { %v1845_v30 = vsel %vm881_vm3, %v1844_v28, -inf }
 0xd0f   : > { %1846 = vmax.xlane.f32.xlu0 %v1845_v30 }
 0xd98   : > { %v1678_v31 = vpop.xlane.xlu1 %1677 }
 0xd99   : > { %v1679_v32 = vsub.f32 %v1675_v24, %v1678_v31  ;;  %v3005_v24 = vld [vmem:[%s4853_s15 + $0x60] sm:$0xff]  ;;  %v2993_v31 = vld [vmem:[#allocation9 + $0x1] ss:$0 sm:$0xff] }
 0xd9a   : > { %v3367_v26 = vpack.c.bf16 %v3006_v25, %v3005_v24  ;;  %v2486_v24 = vld [vmem:[#allocation16] sm:$0xff]  ;;  %v2487_v25 = vld [vmem:[#allocation16 + $0x8] sm:$0xff] }
 0xd9b   : > { %v1680_v33 = vmul.f32 1.442695, %v1679_v32 }
 0xd9c   : > { %v1847_v34 = vpop.xlane.xlu0 %1846 }
 0xd9d   : > { %3556 = vpow2.f32 %v1680_v33  ;;  %v1848_v35 = vsub.f32 %v1844_v28, %v1847_v34  ;;  %v2994_v33 = vld [vmem:[#allocation10 + $0x1] ss:$0 sm:$0xff] }
 0xd9f   : > { %v1849_v36 = vmul.f32 1.442695, %v1848_v35 }
 0xda1   : > { %3558 = vpow2.f32 %v1849_v36  ;;  %v3007_v36 = vld [vmem:[%s4853_s15 + $0x70] sm:$0xff] }
 0xda7   : > { %v3557_v37 = vpop.eup %3556 }
 0xda8   : > { %v1682_v38 = vsel %vm881_vm3, %v3557_v37, 0.0 }
 0xda9   : > { %1683 = vadd.xlane.f32.xlu0 %v1682_v38 }
 0xdab   : > { %v3559_v39 = vpop.eup %3558 }
 0xdac   : > { %v1851_v40 = vsel %vm881_vm3, %v3559_v39, 0.0 }
 0xdad   : > { %1852 = vadd.xlane.f32.xlu1 %v1851_v40 }
 0xdbe   : > { %1856 = vrot.lane.b32.xlu1 %v1594_v18, %s4855_s18  ;;  %s4710_s18 = sshll.u32 %s4075_s27, 7 }
 0xdbf   : > { %1687 = vrot.lane.b32.xlu0 %v1594_v18, %s4856_s19  ;;  %v3001_v18 = vld [vmem:[%s4853_s15 + $0x40] sm:$0xff]  ;;  %s2719_s19 = sadd.s32 1, %s4710_s18  ;;  %s2718_s30 = sld [smem:[#allocation3 + %s4710_s18]] }
 0xdc0   : > { %v3361_v21 = vpack.c.bf16 %v3002_v19, %v3001_v18  ;;  %s2720_s26 = sld [smem:[#allocation3 + %s2719_s19]] }
 0xe36   : > { %v1684_v41 = vpop.xlane.xlu0 %1683 }
 0xe37   : > { %3560 = vrcp.f32 %v1684_v41 }
 0xe3a   : > { %v1853_v42 = vpop.xlane.xlu1 %1852  ;;  %v1688_v43 = vpop.permute.xlu0 %1687 }
 0xe3b   : > { %3562 = vrcp.f32 %v1853_v42  ;;  %3205 = vmatpush3.msra.mxu1 %v1688_v43 }
 0xe3c   : > { %3214 = vmatprep.subr.mxu1 %v3940_v10 }
 0xe3e   : > { %v1857_v48 = vpop.permute.xlu1 %1856 }
 0xe41   : > { %v3561_v44 = vpop.eup %3560 }
 0xe42   : > { %v1686_v45 = vmul.f32 %v3561_v44, %v3557_v37  ;;  %v3008_v37 = vld [vmem:[%s4853_s15 + $0x78] sm:$0xff] }
 0xe43   : > { %v3370_v38 = vpack.c.bf16 %v3008_v37, %v3007_v36  ;;  %v3009_v44 = vld [vmem:[#allocation13 + $0x1] ss:$0 sm:$0xff] }
 0xe44   : > { %3207 = vmatmul.mubr.msk.f32.vlgmr.msra.gmra.mrb[10].mxu1 %vm881_vm3, %v1686_v45 }
 0xe45   : > { %v3563_v49 = vpop.eup %3562  ;;  %3215 = vmatpush3.msra.mxu1 %v1857_v48  ;;  %3216 = vmatprep.mubr.msk.f32.mxu1 %vm3939_vm0, %v3940_v10 }
 0xe46   : > { %v1855_v51 = vmul.f32 %v3563_v49, %v3559_v39  ;;  %3351 = vmatprep.subr.bf16.mxu1 %v3937_v4  ;;  %v2999_v39 = vld [vmem:[#allocation12 + $0x1] ss:$0 sm:$0xff] }
 0xe48   : > { %3217 = vmatmul.mubr.msk.f32.vlgmr.msra.gmra.mrb[12].mxu1 %vm881_vm3, %v1855_v51 }
 0xe49   : > { %3353 = vmatpush3.bf16.msra.mxu1 %v3352_v50  ;;  %3230 = vmatprep.mubr.msk.f32.mxu1 %vm3939_vm0, %v3940_v10 }
 0xe4a   : > { %3360 = vmatprep.subr.bf16.mxu1 %v3937_v4 }
 0xf17   : > { %v1759_v55 = vpop.f32.mrb[10].mxu1 }
 0xf18   : > { %v3208_v56 = vpop.f32.mrb[11].mxu1  ;;  %3231 = vmatmul.mubr.msk.f32.vlgmr.msra.gmra.mrb[14].mxu1 %vm805_vm2, %v1759_v55  ;;  %v2328_v55 = vld [vmem:[%s4857_s20] sm:$0xff] }
 0xf19   : > { %3260 = vmatprep.mubr.msk.f32.mxu1 %vm3939_vm0, %v3940_v10  ;;  %3362 = vmatpush3.bf16.msra.mxu1 %v3361_v21  ;;  %v2329_v56 = vld [vmem:[%s4857_s20 + $0x8] sm:$0xff]  ;;  %v2407_v21 = vld [vmem:[%s4858_s14 + $0x10] sm:$0xff] }
 0xf1a   : > { %3363 = vmatprep.subr.bf16.mxu1 %v3937_v4 }
 0xf1b   : > { %v1928_v57 = vpop.f32.mrb[12].mxu1 }
 0xf1c   : > { %v3218_v58 = vpop.f32.mrb[13].mxu1  ;;  %3224 = vmatmul.mubr.msk.f32.vlgmr.msra.gmra.mrb[14].mxu0 %vm805_vm2, %v1928_v57  ;;  %v2330_v57 = vld [vmem:[%s4857_s20 + $0x10] sm:$0xff] }
 0xf1d   : > { %3241 = vmatprep.mubr.msk.f32.mxu0 %vm3939_vm0, %v3940_v10  ;;  %3356 = vmatpush3.bf16.msra.mxu0 %v3355_v14  ;;  %v3373_v58 = vpack.c.bf16 %v2329_v56, %v2328_v55 }
 0xf1e   : > { %3357 = vmatprep.subr.bf16.mxu0 %v3937_v4  ;;  %3365 = vmatpush3.bf16.msra.mxu1 %v3364_v23  ;;  %v3382_v23 = vpack.c.bf16 %v2408_v22, %v2407_v21 }
 0xf1f   : > { %3366 = vmatprep.subr.bf16.mxu1 %v3937_v4 }
 0xf22   : > { %3368 = vmatpush3.bf16.msra.mxu1 %v3367_v26  ;;  %v2563_v26 = vld [vmem:[#allocation18] sm:$0xff] }
 0xf23   : > { %3369 = vmatprep.subr.bf16.mxu1 %v3937_v4 }
 0xf26   : > { %3371 = vmatpush3.bf16.msra.mxu1 %v3370_v38 }
 0xf27   : > { %3384 = vmatprep.subr.bf16.mxu1 %v3937_v4 }
 0xfeb   : > { %v2076_v59 = vpop.f32.mrb[14].mxu1 }
 0xfec   : > { %v3232_v60 = vpop.f32.mrb[15].mxu1 }
 0xfef   : > { %v2003_v61 = vpop.f32.mrb[14].mxu0 }
 0xff0   : > { %v2077_v62 = vadd.f32 %v2076_v59, %v2003_v61  ;;  %v3225_v63 = vpop.f32.mrb[15].mxu0  ;;  %v2331_v59 = vld [vmem:[%s4857_s20 + $0x18] sm:$0xff] }
 0xff1   : > { %v3376_v60 = vpack.c.bf16 %v2331_v59, %v2330_v57 }
 0xff2   : > { %v2080_v0 = vadd.f32 %v2077_v62, %v4554_v17  ;;  %v3358_v17 = vpack.c.bf16 %v2998_v16, %v2997_v15  ;;  %v2405_v16 = vld [vmem:[%s4858_s14] sm:$0xff] }
 0xff4   : > { %v2085_v1 = vsel %vm728_vm1, %v2080_v0, 0.0  ;;  %3359 = vmatpush3.bf16.msra.mxu0 %v3358_v17  ;;  %v2406_v17 = vld [vmem:[%s4858_s14 + $0x8] sm:$0xff] }
 0xff5   : > { %2086 = vadd.xlane.f32.xlu1 %v2085_v1  ;;  %3372 = vmatprep.subr.bf16.mxu0 %v3937_v4  ;;  %v3012_v1 = vld [vmem:[#allocation15 + $0x1] ss:$0 sm:$0xff]  ;;  %v3379_v19 = vpack.c.bf16 %v2406_v17, %v2405_v16 }
0x1082   : > { %v2087_v2 = vpop.xlane.xlu1 %2086 }
0x1083   : > { %v2088_v3 = vmul.f32 0.03125, %v2087_v2 }
0x1085   : > { %v2089_v5 = vsub.f32 %v2080_v0, %v2088_v3  ;;  %v3013_v3 = vld [vmem:[%s4854_s0 + $0x1] ss:$0 sm:$0xff]  ;;  %s3840_s0 = sshll.u32 %s3946_s6, 4  ;;  %s3841_s0 = int_to_ptr.vmem [resolvable:$false] %s3840_s0 }
0x1086   : > { %s3842_s4 = scalar_lea.vmem %s3841_s0, 256  ;;  %p3843_p12 = scmp.lt.s32.totalorder %s4728_s1, %s3841_s0 }
0x1087   : > { %v2090_v6 = vmul.f32 %v2089_v5, %v2089_v5 }
0x1089   : > { %v2091_v7 = vsel %vm728_vm1, %v2090_v6, 0.0 }
0x108a   : > { %2092 = vadd.xlane.f32.xlu0 %v2091_v7 }
0x1117   : > { %v2093_v27 = vpop.xlane.xlu0 %2092 }
0x1118   : > { %v2094_v28 = vmul.f32 0.03125, %v2093_v27  ;;  %v3385_v27 = vpack.c.bf16 %v2487_v25, %v2486_v24 }
0x111a   : > { %v2095_v29 = vadd.f32 1e-05, %v2094_v28  ;;  %v2564_v28 = vld [vmem:[#allocation18 + $0x8] sm:$0xff] }
0x111c   : > { %3564 = vrsqrt.f32 %v2095_v29  ;;  %v3391_v29 = vpack.c.bf16 %v2564_v28, %v2563_v26 }
0x1126   : > { %v3565_v30 = vpop.eup %3564 }
0x1127   : > { %v2097_v32 = vmul.f32 %v3565_v30, %v2089_v5  ;;  %v2488_v30 = vld [vmem:[#allocation16 + $0x10] sm:$0xff] }
0x1129   : > { %v2104_v34 = vmul.f32 %v2993_v31, %v2097_v32  ;;  %v2489_v31 = vld [vmem:[#allocation16 + $0x18] sm:$0xff]  ;;  %v2565_v32 = vld [vmem:[#allocation18 + $0x10] sm:$0xff] }
0x112b   : > { %v2111_v35 = vadd.f32 %v2994_v33, %v2104_v34  ;;  %v3388_v33 = vpack.c.bf16 %v2489_v31, %v2488_v30  ;;  %v2566_v34 = vld [vmem:[#allocation18 + $0x18] sm:$0xff] }
0x112d   : > { %3242 = vmatmul.mubr.msk.f32.vlgmr.msra.gmra.mrb[16].mxu0 %vm728_vm1, %v2111_v35 }
0x112e   : > { %3271 = vmatprep.mubr.msk.f32.mxu0 %vm3939_vm0, %v3940_v10  ;;  %3374 = vmatpush3.bf16.msra.mxu0 %v3373_v58 }
0x112f   : > { %3375 = vmatprep.subr.bf16.mxu0 %v3937_v4 }
0x1132   : > { %3377 = vmatpush3.bf16.msra.mxu0 %v3376_v60 }
0x1133   : > { %3378 = vmatprep.subr.bf16.mxu0 %v3937_v4 }
0x1200   : > { %v2194_v40 = vpop.f32.mrb[16].mxu0 }
0x1201   : > { %v2195_v41 = vadd.f32 %v2999_v39, %v2194_v40  ;;  %v3243_v42 = vpop.f32.mrb[17].mxu0 }
0x1203   : > { %v2198_v43 = vmax.f32 %v2195_v41, 0.0 }
0x1205   : > { %3261 = vmatmul.mubr.msk.f32.vlgmr.msra.gmra.mrb[16].mxu1 %vm1416_vm4, %v2198_v43 }
0x1206   : > { %3293 = vmatprep.mubr.msk.f32.mxu1 %vm3939_vm0, %v3940_v10  ;;  %3386 = vmatpush3.bf16.msra.mxu1 %v3385_v27 }
0x1207   : > { %3387 = vmatprep.subr.bf16.mxu1 %v3937_v4 }
0x120a   : > { %3389 = vmatpush3.bf16.msra.mxu1 %v3388_v33 }
0x120b   : > { %3307 = vmatprep.subr.mxu1 %v3940_v10 }
0x12d8   : > { %v2285_v45 = vpop.f32.mrb[16].mxu1 }
0x12d9   : > { %v2286_v46 = vadd.f32 %v3009_v44, %v2285_v45  ;;  %v3262_v47 = vpop.f32.mrb[17].mxu1  ;;  %v2722_v45 = vstv %s2718_s30  ;;  %s4860_s30 = sld [smem:[#allocation39_spill]] }
0x12da   : > { %vm2723_vm5 = vcmp.eq.s32.totalorder %v4424_v12, %v2722_v45 }
0x12db   : > { %v2289_v48 = vadd.f32 %v2286_v46, %v2111_v35  ;;  %v3394_v35 = vpack.c.bf16 %v2566_v34, %v2565_v32  ;;  %v2724_v46 = vstv %s2720_s26 }
0x12dc   : > { %vm2728_vm9 = vcmp.eq.s32.totalorder %v4424_v12, %v2724_v46 }
0x12dd   : > { %v2294_v49 = vsel %vm728_vm1, %v2289_v48, 0.0 }
0x12de   : > { %2295 = vadd.xlane.f32.xlu0 %v2294_v49 }
0x12df   : > { %s4726_s26 = scalar_lea.hbm %s4860_s30, %s4710_s18 }
0x136b   : > { %v2296_v50 = vpop.xlane.xlu0 %2295 }
0x136c   : > { %v2297_v51 = vmul.f32 0.03125, %v2296_v50 }
0x136e   : > { %v2298_v52 = vsub.f32 %v2289_v48, %v2297_v51 }
0x1370   : > { %v2299_v53 = vmul.f32 %v2298_v52, %v2298_v52 }
0x1372   : > { %v2300_v54 = vsel %vm728_vm1, %v2299_v53, 0.0 }
0x1373   : > { %2301 = vadd.xlane.f32.xlu1 %v2300_v54 }
0x1400   : > { %v2302_v61 = vpop.xlane.xlu1 %2301 }
0x1401   : > { %v2303_v62 = vmul.f32 0.03125, %v2302_v61 }
0x1403   : > { %v2304_v63 = vadd.f32 1e-05, %v2303_v62 }
0x1405   : > { %3566 = vrsqrt.f32 %v2304_v63 }
0x140f   : > { %v3567_v0 = vpop.eup %3566 }
0x1410   : > { %v2306_v2 = vmul.f32 %v3567_v0, %v2298_v52 }
0x1412   : > { %v2313_v5 = vmul.f32 %v3012_v1, %v2306_v2 }
0x1414   : > { %v2320_v6 = vadd.f32 %v3013_v3, %v2313_v5 }
0x1416   : > { %v2321_v7 = vsel %vm728_vm1, %v2320_v6, -inf }
0x1417   : > { %v2322_v8 = vrot.slane %v2321_v7, 4 }
0x1419   : > { %v2323_v9 = vmax.f32 %v2321_v7, %v2322_v8 }
0x141b   : > { %v2324_v14 = vrot.slane %v2323_v9, 2 }
0x141d   : > { %v2325_v15 = vmax.f32 %v2323_v9, %v2324_v14 }
0x141f   : > { %v2326_v18 = vrot.slane %v2325_v15, 1 }
0x1421   : > { %v2327_v20 = vmax.f32 %v2325_v15, %v2326_v18 }
0x1423   : > { %3272 = vmatmul.mubr.msk.f32.vlgmr.msra.gmra.mrb[18].mxu0 %vm728_vm1, %v2327_v20 }
0x1424   : > { %3380 = vmatpush3.bf16.msra.mxu0 %v3379_v19  ;;  %3282 = vmatprep.mubr.msk.f32.mxu0 %vm3939_vm0, %v3940_v10 }
0x1425   : > { %3381 = vmatprep.subr.bf16.mxu0 %v3937_v4 }
0x1428   : > { %3383 = vmatpush3.bf16.msra.mxu0 %v3382_v23 }
0x1429   : > { %3390 = vmatprep.subr.bf16.mxu0 %v3937_v4 }
0x142b   : > { %3283 = vmatmul.mubr.msk.f32.vlgmr.msra.gmra.mrb[20].mxu0 %vm728_vm1, %v2320_v6 }
0x142c   : > { %3304 = vmatprep.mubr.msk.f32.mxu0 %vm3939_vm0, %v3940_v10  ;;  %3392 = vmatpush3.bf16.msra.mxu0 %v3391_v29 }
0x142d   : > { %3393 = vmatprep.subr.bf16.mxu0 %v3937_v4 }
0x1430   : > { %3395 = vmatpush3.bf16.msra.mxu0 %v3394_v35 }
0x14f6   : > { %v2401_v36 = vpop.f32.mrb[18].mxu0 }
0x14f7   : > { %v3273_v37 = vpop.f32.mrb[19].mxu0  ;;  %v2412_v38 = vrot.slane %v2401_v36, %v709_v13  ;;  %v2716_v13 = vand.u32 127, %v707_v11 }
0x14f9   : > { %vm2725_vm6 = vcmp.eq.s32.totalorder %v2716_v13, %v2724_v46  ;;  %vm2721_vm7 = vcmp.eq.s32.totalorder %v4424_v12, %v2716_v13  ;;  %vm2729_vm10 = vcmp.eq.s32.totalorder %v2716_v13, %v2722_v45 }
0x14fa   : > { %vm2726_vm8 = vmand %vm2723_vm5, %vm2725_vm6 }
0x14fb   : > { %vm2727_vm11 = vmor %vm2721_vm7, %vm2726_vm8 }
0x14fc   : > { %vm2730_vm12 = vmand %vm2728_vm9, %vm2729_vm10 }
0x14fd   : > { %vm2731_vm13 = vmor %vm2727_vm11, %vm2730_vm12 }
0x14fe   : > { %v2482_v39 = vpop.f32.mrb[20].mxu0 }
0x14ff   : > { %v2483_v40 = vadd.f32 %v2482_v39, %v2412_v38  ;;  %v3284_v41 = vpop.f32.mrb[21].mxu0 }
0x1501   : > { %3294 = vmatmul.mubr.msk.f32.vlgmr.msra.gmra.mrb[18].mxu1 %vm728_vm1, %v2483_v40  ;;  %3305 = vmatmul.mubr.msk.f32.vlgmr.msra.gmra.mrb[22].mxu0 %vm728_vm1, %v2483_v40 }
0x1502   : > { %3309 = vmatprep.mubr.msk.f32.mxu1 %vm3939_vm0, %v3940_v10 }
0x15d4   : > { %v2559_v4 = vpop.f32.mrb[18].mxu1  ;;  %v2633_v42 = vpop.f32.mrb[22].mxu0 }
0x15d5   : > { %v3295_v43 = vpop.f32.mrb[19].mxu1  ;;  %v3306_v44 = vpop.f32.mrb[23].mxu0  ;;  %3308 = vmatpush3.xpose.msk.msra.mxu1 %vm728_vm1, %v2633_v42 }
0x15d8   : > { %3310 = vmatmul.mubr.msk.f32.vlgmr.msra.gmra.mrb[20].mxu1 %vm728_vm1, %v2559_v4 }
0x16ab   : > { %v2709_v10 = vpop.f32.mrb[20].mxu1 }
0x16ac   : > { %v2732_v47 = vsel %vm2731_vm13, -inf, %v2709_v10  ;;  %v3311_v48 = vpop.f32.mrb[21].mxu1 }
0x16ad   : > { %v2733_v49 = vsel %vm881_vm3, %v2732_v47, -inf }
0x16ae   : > { %2734 = vmax.xlane.f32.xlu0 %v2733_v49 }
0x173b   : > { %v2735_v11 = vpop.xlane.xlu0 %2734 }
0x173c   : > { %v2736_v50 = vrot.slane %v2735_v11, 4 }
0x173e   : > { %v2737_v51 = vmax.f32 %v2735_v11, %v2736_v50 }
0x1740   : > { %v2738_v52 = vrot.slane %v2737_v51, 2 }
0x1742   : > { %v2739_v53 = vmax.f32 %v2737_v51, %v2738_v52 }
0x1744   : > { %v2740_v54 = vrot.slane %v2739_v53, 1 }
0x1746   : > { %v2741_v55 = vmax.f32 %v2739_v53, %v2740_v54 }
0x1748   : > { %3396 = vpush %v2741_v55 }
0x1779   : > { %s3397_s27 = spop %3396 }
0x177a   : > { %v2743_v12 = vstv %s3397_s27  ;;  %s2763_s27 = scalar_lea.sflag [#allocation6], %s4370_s9 }
0x177b   : > { %v2744_v56 = vsub.f32 %v2732_v47, %v2743_v12 }
0x177d   : > { %v2745_v57 = vmul.f32 1.442695, %v2744_v56 }
0x177f   : > { %3568 = vpow2.f32 %v2745_v57 }
0x1789   : > { %v3569_v58 = vpop.eup %3568 }
0x178a   : > { %v2747_v59 = vsel %vm881_vm3, %v3569_v58, 0.0 }
0x178b   : > { %2748 = vadd.xlane.f32.xlu1 %v2747_v59 }
0x1818   : > { %v2749_v60 = vpop.xlane.xlu1 %2748 }
0x1819   : > { %v2750_v61 = vrot.slane %v2749_v60, 4 }
0x181b   : > { %v2751_v62 = vadd.f32 %v2750_v61, %v2749_v60 }
0x181d   : > { %v2752_v63 = vrot.slane %v2751_v62, 2 }
0x181f   : > { %v2753_v0 = vadd.f32 %v2752_v63, %v2751_v62 }
0x1821   : > { %v2754_v1 = vrot.slane %v2753_v0, 1 }
0x1823   : > { %v2755_v2 = vadd.f32 %v2754_v1, %v2753_v0 }
0x1825   : > { %3398 = vpush %v2755_v2 }
0x1856   : > { %s3399_s21 = spop %3398 }
0x1857   : > { %v2757_v3 = vstv %s3399_s21  ;;  %s3836_s21 = scalar_lea.vmem %s4728_s1, 128 }
0x1858   : > { %3570 = vlog2.f32 %v2757_v3  ;;  %p3837_p10 = scmp.ne.s32.totalorder %s4728_s1, %s3836_s21  ;;  %p3844_p2 = scmp.lt.s32.totalorder %s3842_s4, %s3836_s21 }
0x185a   : > { %p3838_p4 = pnand %p3837_p10, %p4861_p7  ;;  %p3845_p3 = por %p3844_p2, %p3843_p12 }
0x185c   : > { %p3839_p6 = pneg %p3838_p4 }
0x185e   : > { %p3846_p5 = pnand %p3845_p3, %p3839_p6 }
0x1862   : > { %v3571_v5 = vpop.eup %3570 }
0x1863   : > { %v2759_v6 = vmul.f32 0.6931472, %v3571_v5 }
0x1865   : > { %v2760_v7 = vsub.f32 %v2744_v56, %v2759_v6 }
0x1867   : > { %2761 = vst.msk [vmem:[%s695_s28] sm:$0xff] %vm881_vm3, %v2760_v7 }
0x1868   : > { %3849 = shalt.err (!%p3846_p5)
}
0x1869   : > { %s3850_s9 = scalar_lea.hbm %s4726_s26, 128  ;;  %s3854_s13 = scalar_lea.hbm %s4860_s30, 256 }
0x186a   : > { %p3851_p11 = scmp.ne.s32.totalorder %s4726_s26, %s3850_s9  ;;  %p3855_p9 = scmp.lt.u32.totalorder %s4726_s26, %s4860_s30 }
0x186b   : > { %p3856_p1 = scmp.lt.u32.totalorder %s3854_s13, %s3850_s9  ;;  %p3858_p10 = scmp.lt.u32.totalorder %s3850_s9, %s4726_s26 }
0x186c   : > { %p3852_p13 = pnand %p3851_p11, %p4861_p7 }
0x186d   : > { %p3857_p8 = por %p3856_p1, %p3855_p9 }
0x186e   : > { %p3853_p0 = pneg %p3852_p13 }
0x186f   : > { %p3859_p4 = por %p3858_p10, %p3857_p8 }
0x1871   : > { %p3860_p6 = pnand %p3859_p4, %p3853_p0 }
0x1873   : > { %3863 = shalt.err (!%p3860_p6)
}
0x1874   : > { %3434 = dma.vmem_to_hbm [thread:$0]  (%p4861_p7), %s4728_s1, 128, %s4726_s26, %s2763_s27  }
0x1875 PF: > { %s2788_s4 = sand.u32 1, %s3908_s2   ;;  %p4862_p12 = scmp.ne.s32.totalorder %s4839_s3, 0 }
0x1876   : > { %p4863_p2 = scmp.ge.s32.totalorder %s3920_s24, 2  ;;  %s2789_s21 = scalar_lea.sflag [#allocation6], %s2788_s4 }
0x1878   : > { %p3466_p3 = pnand %p4863_p2, %p4862_p12 }
0x187a   : > { %3903 = dma.done.wait (!%p3466_p3), %s2789_s21, 128  }
0x187b   : > { %3905 = vsyncadd (!%p3466_p3), %s2789_s21, 4294967168  ;;  %p39_p5 = scmp.ge.s32.totalorder %s4294_s29, 4   ;;  %s4864_s2 = smov %s3912_s10 }
0x187c   : > { %s4865_s10 = smov %s3916_s23  ;;  %s4866_s23 = smov %s4305_s7 }
0x187d   : > { %s4867_s24 = smov %s4294_s29  ;;  %41 = sbr.rel (!%p39_p5) target bundleno = 30 (0x1e), region = 178 }
0x1884   :  { %2794 = vsyncpa [#allocation5], 1 }
0x1885   :  { %2796 = vsyncpa [#allocation5 + $0x1], 1 }
0x1886   :  { %2797 = vsyncpa [#allocation8], 1 }
0x1887   :  { %2798 = vsyncpa [#allocation11], 1 }
0x1888   :  { %2799 = vsyncpa [#allocation14], 1 }
0x1889   :  { %2800 = vsyncpa [#allocation17], 1 }
0x188a   :  { %2801 = vsyncpa [#allocation6], 1 }
0x188b   :  { %2803 = vsyncpa [#allocation6 + $0x1], 1 }

</bundles_post_ra>
